<compile_context>
chip_gen: v7x
topology: tpu7x:2x2x1
jax: 0.10.0
libtpu: 0.0.40
codegen_flags: <defaults>
</compile_context>

<pallas_src>
import math
import numpy as np
import jax
import jax.numpy as jnp
from jax import lax
from jax.experimental import pallas as pl
from jax.experimental.pallas import tpu as pltpu

_L2_EPS = 1e-12   # tiny epsilon under the sqrt of l2norm (avoids 0/0; negligible otherwise)
_BN_EPS = 1e-5    # PyTorch BatchNorm1d default


def _sigmoid(x):
    return 1.0 / (1.0 + jnp.exp(-x))


# --------------------------------------------------------------------------------------
# Pass 1: per-batch fc / position gate / gated multi-head self-attention (pre-BN)
# --------------------------------------------------------------------------------------
def _pass1_kernel(img_ref, posi_ref,
                  fcw_ref, fcb_ref, pew_ref, peb_ref,
                  wq_ref, bq_ref, wk_ref, bk_ref, wv_ref, bv_ref,
                  wfq_ref, bfq_ref, wfk_ref, bfk_ref, wfg_ref, bfg_ref,
                  fc_ref, att_ref, s1_ref, s2_ref):
    heads, D, dk = wq_ref.shape
    N = img_ref.shape[0]
    inv_sqrt_dk = 1.0 / math.sqrt(dk)
    f32 = jnp.float32
    bf16 = jnp.bfloat16

    # fc projection + l2norm over the region axis (dim=1 of the (B, N, D) tensor)
    fc = jnp.dot(img_ref[...], fcw_ref[...], preferred_element_type=f32) + fcb_ref[...]
    fc = fc * lax.rsqrt(jnp.sum(fc * fc, axis=0, keepdims=True) + _L2_EPS)
    fc_ref[...] = fc

    # position encoder: Linear(6 -> D) + sigmoid
    pos_emb = _sigmoid(jnp.dot(posi_ref[...], pew_ref[...], preferred_element_type=f32)
                       + peb_ref[...])

    # AGSA input, shared across heads; all per-head work is head-batched (no Python head loop)
    x = (fc * pos_emb).astype(bf16)                      # (N, D)
    x3 = jnp.broadcast_to(x, (heads, N, D))              # (heads, N, D)

    q = jnp.einsum('hnd,hde->hne', x3, wq_ref[...], preferred_element_type=f32) + bq_ref[...]
    k = jnp.einsum('hnd,hde->hne', x3, wk_ref[...], preferred_element_type=f32) + bk_ref[...]
    v = jnp.einsum('hnd,hde->hne', x3, wv_ref[...], preferred_element_type=f32) + bv_ref[...]

    # gating: M = sigmoid(fc_g(fc_q(q) * fc_k(k)))  (gate weights shared across heads)
    gq = jnp.einsum('hne,hef->hnf', q.astype(bf16), wfq_ref[...],
                    preferred_element_type=f32) + bfq_ref[...]
    gk = jnp.einsum('hne,hef->hnf', k.astype(bf16), wfk_ref[...],
                    preferred_element_type=f32) + bfk_ref[...]
    m = _sigmoid(jnp.einsum('hnf,hfg->hng', (gq * gk).astype(bf16), wfg_ref[...],
                            preferred_element_type=f32) + bfg_ref[...])       # (heads, N, 2dk)
    qg = (q * m[..., :dk]).astype(bf16)
    kg = (k * m[..., dk:]).astype(bf16)

    # scaled dot-product attention, batched over the head axis
    scores = jnp.einsum('hne,hme->hnm', qg, kg, preferred_element_type=f32) * inv_sqrt_dk
    scores = scores - jnp.max(scores, axis=-1, keepdims=True)
    e = jnp.exp(scores)
    p = e * pl.reciprocal(jnp.sum(e, axis=-1, keepdims=True), approx=True)
    att = jnp.einsum('hnm,hme->hne', p.astype(bf16), v.astype(bf16),
                     preferred_element_type=f32)                              # (heads, N, dk)

    att_ref[...] = att
    # per-batch partial sums for BatchNorm1d statistics (finalized in the wrapper)
    s1_ref[...] = jnp.sum(att, axis=1)
    s2_ref[...] = jnp.sum(att * att, axis=1)


# --------------------------------------------------------------------------------------
# Pass 2: BatchNorm scale/shift + residual + final l2norm(dim=1)
# --------------------------------------------------------------------------------------
def _pass2_kernel(fc_ref, att_ref, scale_ref, shift_ref, out_ref):
    emb = fc_ref[...] + att_ref[...] * scale_ref[...] + shift_ref[...]
    out_ref[...] = (emb * lax.rsqrt(jnp.sum(emb * emb, axis=0, keepdims=True) + _L2_EPS)
                    ).astype(out_ref.dtype)


# --------------------------------------------------------------------------------------
# BlockSpec helpers
# --------------------------------------------------------------------------------------
def _batch_spec(shape):
    """One batch per grid step; leading batch dim squeezed out of the kernel ref."""
    nd = len(shape)
    return pl.BlockSpec((None,) + tuple(shape[1:]),
                        lambda b, _nd=nd: (b,) + (0,) * (_nd - 1))


def _resident_spec(shape):
    """Full array, constant block index -> stays VMEM-resident across grid steps."""
    nd = len(shape)
    return pl.BlockSpec(tuple(shape), lambda b, _nd=nd: (0,) * _nd)


# --------------------------------------------------------------------------------------
# Wrapper-side glue
# --------------------------------------------------------------------------------------
def absolute_encode(boxes, imgs_wh):
    """absoluteEncode of the CAMERA PositionEncoder (elementwise box prep, glue)."""
    x = boxes[:, :, 0]
    y = boxes[:, :, 1]
    w = boxes[:, :, 2] - boxes[:, :, 0]
    h = boxes[:, :, 3] - boxes[:, :, 1]
    expand_wh = jnp.concatenate([imgs_wh, imgs_wh], axis=1)[:, None, :]          # (B, 1, 4)
    ratio_wh = (w / h)[..., None]                                                # (B, N, 1)
    ratio_area = ((w * h) / (imgs_wh[:, 0] * imgs_wh[:, 1])[:, None])[..., None]
    bxs = jnp.stack([x, y, w, h], axis=2) / expand_wh                            # (B, N, 4)
    return jnp.concatenate([bxs, ratio_wh, ratio_area], axis=-1)                 # (B, N, 6)


def _prep_weights(params):
    """Cast weights to bf16 and lay per-head weights out head-major for batched einsums."""
    (fc_w, fc_b, pe_w, pe_b, wq, bq, wk, bk, wv, bv,
     wfq, bfq, wfk, bfk, wfg, bfg, gamma, beta) = params
    D = fc_w.shape[1]
    dk = wfq.shape[0]
    heads = D // dk
    bf16, f32 = jnp.bfloat16, jnp.float32

    def head_major(w):   # (D, heads*dk) -> (heads, D, dk)
        return jnp.transpose(w.reshape(D, heads, dk), (1, 0, 2)).astype(bf16)

    def head_bias(b):    # (1, heads*dk) -> (heads, 1, dk)
        return b.reshape(heads, dk)[:, None, :].astype(f32)

    def per_head(w):     # (dk, X) -> (heads, dk, X)  (shared gate weights, replicated)
        return jnp.broadcast_to(w.astype(bf16)[None], (heads,) + w.shape)

    weights = [
        fc_w.astype(bf16), fc_b.astype(f32),
        pe_w.astype(bf16), pe_b.astype(f32),
        head_major(wq), head_bias(bq),
        head_major(wk), head_bias(bk),
        head_major(wv), head_bias(bv),
        per_head(wfq), bfq.astype(f32),
        per_head(wfk), bfk.astype(f32),
        per_head(wfg), bfg.astype(f32),
    ]
    return weights, gamma.astype(f32), beta.astype(f32), heads, dk


def encoder_image_precomp_self_attn(images, boxes, imgs_wh, params):
    B, N, _ = images.shape
    D = params[0].shape[1]
    weights, gamma, beta, heads, dk = _prep_weights(params)

    posi = absolute_encode(boxes, imgs_wh)                       # (B, N, 6) — glue
    p1_inputs = [images.astype(jnp.bfloat16), posi.astype(jnp.bfloat16)] + weights

    cparams = pltpu.CompilerParams(dimension_semantics=("parallel",),
                                   vmem_limit_bytes=48 * 1024 * 1024)

    fc, att_h, s1_b, s2_b = pl.pallas_call(
        _pass1_kernel,
        grid=(B,),
        in_specs=[_batch_spec(a.shape) for a in p1_inputs[:2]]
                 + [_resident_spec(w.shape) for w in weights],
        out_specs=(
            _batch_spec((B, N, D)),
            _batch_spec((B, heads, N, dk)),
            _batch_spec((B, heads, dk)),
            _batch_spec((B, heads, dk)),
        ),
        out_shape=(
            jax.ShapeDtypeStruct((B, N, D), jnp.float32),            # fc (l2-normed)
            jax.ShapeDtypeStruct((B, heads, N, dk), jnp.float32),    # pre-BN attention
            jax.ShapeDtypeStruct((B, heads, dk), jnp.float32),       # sum(att)   per batch
            jax.ShapeDtypeStruct((B, heads, dk), jnp.float32),       # sum(att^2) per batch
        ),
        compiler_params=cparams,
    )(*p1_inputs)

    # head-major -> lane-dense (B, N, D) layout for BN / residual (layout plumbing only).
    att = att_h.transpose(0, 2, 1, 3).reshape(B, N, D)

    # BatchNorm1d training-mode (biased) batch statistics — tiny (D,)-sized math.
    # TODO(synk): running_mean/running_var buffer updates (stateful training bookkeeping)
    # are not produced; only the forward output is.
    cnt = float(B * N)
    mean = s1_b.sum(axis=0).reshape(D) / cnt
    var = s2_b.sum(axis=0).reshape(D) / cnt - mean * mean
    inv_std = lax.rsqrt(var + _BN_EPS)
    g = gamma.reshape(D)
    scale = (g * inv_std).reshape(1, D)
    shift = (beta.reshape(D) - mean * g * inv_std).reshape(1, D)

    out = pl.pallas_call(
        _pass2_kernel,
        grid=(B,),
        in_specs=[_batch_spec((B, N, D)), _batch_spec((B, N, D)),
                  _resident_spec((1, D)), _resident_spec((1, D))],
        out_specs=_batch_spec((B, N, D)),
        out_shape=jax.ShapeDtypeStruct((B, N, D), jnp.float32),
        compiler_params=cparams,
    )(fc, att, scale, shift)
    return out


encoder_fwd = jax.jit(encoder_image_precomp_self_attn)


# --------------------------------------------------------------------------------------
# Parameter init (matches the PyTorch module's init_weights / nn.Linear defaults)
# --------------------------------------------------------------------------------------
def init_params(key, img_dim, embed_size, head, posi_dim=6):
    dk = embed_size // head
    keys = jax.random.split(key, 8)

    # Xavier-uniform for self.fc (as in init_weights)
    r = float(np.sqrt(6.0) / np.sqrt(img_dim + embed_size))
    fc_w = jax.random.uniform(keys[0], (img_dim, embed_size), jnp.float32, -r, r)
    fc_b = jnp.zeros((1, embed_size), jnp.float32)

    def linear(k, fan_in, fan_out):
        bound = 1.0 / float(np.sqrt(fan_in))
        k1, k2 = jax.random.split(k)
        w = jax.random.uniform(k1, (fan_in, fan_out), jnp.float32, -bound, bound)
        b = jax.random.uniform(k2, (1, fan_out), jnp.float32, -bound, bound)
        return w, b

    pe_w, pe_b = linear(keys[1], posi_dim, embed_size)
    wq, bq = linear(keys[2], embed_size, embed_size)
    wk, bk = linear(keys[3], embed_size, embed_size)
    wv, bv = linear(keys[4], embed_size, embed_size)
    wfq, bfq = linear(keys[5], dk, dk)
    wfk, bfk = linear(keys[6], dk, dk)
    wfg, bfg = linear(keys[7], dk, 2 * dk)
    gamma = jnp.ones((1, embed_size), jnp.float32)
    beta = jnp.zeros((1, embed_size), jnp.float32)

    return [fc_w, fc_b, pe_w, pe_b, wq, bq, wk, bk, wv, bv,
            wfq, bfq, wfk, bfk, wfg, bfg, gamma, beta]


if __name__ == "__main__":
    # small shapes consistent with the module
    B, N = 2, 8          # batch, num_regions
    img_dim = 20
    embed_size = 32
    head = 2
    smry_k = 12          # unused by this module's forward
    drop = 0.0           # dropout disabled -> identity in forward

    key = jax.random.PRNGKey(0)
    k_img, k_box, k_par = jax.random.split(key, 3)

    images = jax.random.normal(k_img, (B, N, img_dim), jnp.float32)

    imgs_wh = jnp.array([[640.0, 480.0], [800.0, 600.0]], jnp.float32)          # (B, 2)
    kb1, kb2 = jax.random.split(k_box)
    x1y1 = jax.random.uniform(kb1, (B, N, 2), jnp.float32, 0.0, 1.0) * (imgs_wh[:, None, :] * 0.4)
    wh = 1.0 + jax.random.uniform(kb2, (B, N, 2), jnp.float32, 0.0, 1.0) * (imgs_wh[:, None, :] * 0.4)
    boxes = jnp.concatenate([x1y1, x1y1 + wh], axis=-1)                          # (B, N, 4)

    params = init_params(k_par, img_dim, embed_size, head)

    out = encoder_fwd(images, boxes, imgs_wh, params)
    out = jax.block_until_ready(out)

    assert out.shape == (B, N, embed_size), out.shape
    assert bool(jnp.all(jnp.isfinite(out)))
    print("KERNEL_OK")
</pallas_src>

<mosaic_0001>
module attributes {stable_mosaic.version = 11 : i64} {
  func.func @_pass2_kernel(%arg0: i32, %arg1: memref<1x8x32xf32, #tpu.memory_space<vmem>>, %arg2: memref<1x8x32xf32, #tpu.memory_space<vmem>>, %arg3: memref<1x32xf32, #tpu.memory_space<vmem>>, %arg4: memref<1x32xf32, #tpu.memory_space<vmem>>, %arg5: memref<1x8x32xf32, #tpu.memory_space<vmem>>) attributes {dimension_semantics = [#tpu.dimension_semantics<parallel>], iteration_bounds = array<i64: 2>, scalar_prefetch = 0 : i64, scratch_operands = 0 : i64, tpu.core_type = #tpu.core_type<tc>, window_params = [{transform_indices = @transform_0, window_bounds = array<i64: 1, 8, 32>}, {transform_indices = @transform_1, window_bounds = array<i64: 1, 8, 32>}, {pipeline_mode = #tpu.pipeline_mode<synchronous>, transform_indices = @transform_2, window_bounds = array<i64: 1, 32>}, {pipeline_mode = #tpu.pipeline_mode<synchronous>, transform_indices = @transform_3, window_bounds = array<i64: 1, 32>}, {transform_indices = @transform_4, window_bounds = array<i64: 1, 8, 32>}]} {
    %c0 = arith.constant 0 : index
    %c0_0 = arith.constant 0 : index
    %c0_1 = arith.constant 0 : index
    %0 = vector.load %arg1[%c0, %c0_0, %c0_1] : memref<1x8x32xf32, #tpu.memory_space<vmem>>, vector<1x8x32xf32>
    %1 = vector.shape_cast %0 : vector<1x8x32xf32> to vector<8x32xf32>
    %c0_2 = arith.constant 0 : index
    %c0_3 = arith.constant 0 : index
    %c0_4 = arith.constant 0 : index
    %2 = vector.load %arg2[%c0_2, %c0_3, %c0_4] : memref<1x8x32xf32, #tpu.memory_space<vmem>>, vector<1x8x32xf32>
    %3 = vector.shape_cast %2 : vector<1x8x32xf32> to vector<8x32xf32>
    %c0_5 = arith.constant 0 : index
    %c0_6 = arith.constant 0 : index
    %4 = vector.load %arg3[%c0_5, %c0_6] : memref<1x32xf32, #tpu.memory_space<vmem>>, vector<1x32xf32>
    %5 = vector.broadcast %4 : vector<1x32xf32> to vector<8x32xf32>
    %6 = arith.mulf %3, %5 : vector<8x32xf32>
    %7 = arith.addf %1, %6 : vector<8x32xf32>
    %c0_7 = arith.constant 0 : index
    %c0_8 = arith.constant 0 : index
    %8 = vector.load %arg4[%c0_7, %c0_8] : memref<1x32xf32, #tpu.memory_space<vmem>>, vector<1x32xf32>
    %9 = vector.broadcast %8 : vector<1x32xf32> to vector<8x32xf32>
    %10 = arith.addf %7, %9 : vector<8x32xf32>
    %11 = arith.mulf %10, %10 : vector<8x32xf32>
    %cst = arith.constant dense<0.000000e+00> : vector<32xf32>
    %12 = vector.multi_reduction <add>, %11, %cst [0] : vector<8x32xf32> to vector<32xf32>
    %13 = vector.shape_cast %12 : vector<32xf32> to vector<1x32xf32>
    %cst_9 = arith.constant 9.99999996E-13 : f32
    %14 = vector.broadcast %cst_9 : f32 to vector<1x32xf32>
    %15 = arith.addf %13, %14 : vector<1x32xf32>
    %16 = math.rsqrt %15 : vector<1x32xf32>
    %17 = vector.broadcast %16 : vector<1x32xf32> to vector<8x32xf32>
    %18 = arith.mulf %10, %17 : vector<8x32xf32>
    %c0_10 = arith.constant 0 : index
    %c0_11 = arith.constant 0 : index
    %c0_12 = arith.constant 0 : index
    %19 = vector.load %arg5[%c0_10, %c0_11, %c0_12] : memref<1x8x32xf32, #tpu.memory_space<vmem>>, vector<1x8x32xf32>
    %20 = vector.shape_cast %19 : vector<1x8x32xf32> to vector<8x32xf32>
    %21 = vector.shape_cast %18 : vector<8x32xf32> to vector<1x8x32xf32>
    tpu.vector_store %arg5[%c0_10, %c0_11, %c0_12], %21 {strides = array<i32>} : memref<1x8x32xf32, #tpu.memory_space<vmem>>, vector<1x8x32xf32>,
    return
  }
  func.func @transform_0(%arg0: i32) -> (i32, i32, i32) {
    %c0_i32 = arith.constant 0 : i32
    %c0_i32_0 = arith.constant 0 : i32
    %c0_i32_1 = arith.constant 0 : i32
    return %arg0, %c0_i32, %c0_i32_0 : i32, i32, i32
  }
  func.func @transform_1(%arg0: i32) -> (i32, i32, i32) {
    %c0_i32 = arith.constant 0 : i32
    %c0_i32_0 = arith.constant 0 : i32
    %c0_i32_1 = arith.constant 0 : i32
    return %arg0, %c0_i32, %c0_i32_0 : i32, i32, i32
  }
  func.func @transform_2(%arg0: i32) -> (i32, i32) {
    %c0_i32 = arith.constant 0 : i32
    %c0_i32_0 = arith.constant 0 : i32
    %c0_i32_1 = arith.constant 0 : i32
    return %c0_i32, %c0_i32_0 : i32, i32
  }
  func.func @transform_3(%arg0: i32) -> (i32, i32) {
    %c0_i32 = arith.constant 0 : i32
    %c0_i32_0 = arith.constant 0 : i32
    %c0_i32_1 = arith.constant 0 : i32
    return %c0_i32, %c0_i32_0 : i32, i32
  }
  func.func @transform_4(%arg0: i32) -> (i32, i32, i32) {
    %c0_i32 = arith.constant 0 : i32
    %c0_i32_0 = arith.constant 0 : i32
    %c0_i32_1 = arith.constant 0 : i32
    return %arg0, %c0_i32, %c0_i32_0 : i32, i32, i32
  }
}

module attributes {stable_mosaic.version = 11 : i64} {
  func.func @_pass1_kernel(%arg0: i32, %arg1: memref<1x8x20xbf16, #tpu.memory_space<vmem>>, %arg2: memref<1x8x6xbf16, #tpu.memory_space<vmem>>, %arg3: memref<20x32xbf16, #tpu.memory_space<vmem>>, %arg4: memref<1x32xf32, #tpu.memory_space<vmem>>, %arg5: memref<6x32xbf16, #tpu.memory_space<vmem>>, %arg6: memref<1x32xf32, #tpu.memory_space<vmem>>, %arg7: memref<2x32x16xbf16, #tpu.memory_space<vmem>>, %arg8: memref<2x1x16xf32, #tpu.memory_space<vmem>>, %arg9: memref<2x32x16xbf16, #tpu.memory_space<vmem>>, %arg10: memref<2x1x16xf32, #tpu.memory_space<vmem>>, %arg11: memref<2x32x16xbf16, #tpu.memory_space<vmem>>, %arg12: memref<2x1x16xf32, #tpu.memory_space<vmem>>, %arg13: memref<2x16x16xbf16, #tpu.memory_space<vmem>>, %arg14: memref<1x16xf32, #tpu.memory_space<vmem>>, %arg15: memref<2x16x16xbf16, #tpu.memory_space<vmem>>, %arg16: memref<1x16xf32, #tpu.memory_space<vmem>>, %arg17: memref<2x16x32xbf16, #tpu.memory_space<vmem>>, %arg18: memref<1x32xf32, #tpu.memory_space<vmem>>, %arg19: memref<1x8x32xf32, #tpu.memory_space<vmem>>, %arg20: memref<1x2x8x16xf32, #tpu.memory_space<vmem>>, %arg21: memref<1x2x16xf32, #tpu.memory_space<vmem>>, %arg22: memref<1x2x16xf32, #tpu.memory_space<vmem>>) attributes {dimension_semantics = [#tpu.dimension_semantics<parallel>], iteration_bounds = array<i64: 2>, scalar_prefetch = 0 : i64, scratch_operands = 0 : i64, tpu.core_type = #tpu.core_type<tc>, window_params = [{transform_indices = @transform_0, window_bounds = array<i64: 1, 8, 20>}, {transform_indices = @transform_1, window_bounds = array<i64: 1, 8, 6>}, {pipeline_mode = #tpu.pipeline_mode<synchronous>, transform_indices = @transform_2, window_bounds = array<i64: 20, 32>}, {pipeline_mode = #tpu.pipeline_mode<synchronous>, transform_indices = @transform_3, window_bounds = array<i64: 1, 32>}, {pipeline_mode = #tpu.pipeline_mode<synchronous>, transform_indices = @transform_4, window_bounds = array<i64: 6, 32>}, {pipeline_mode = #tpu.pipeline_mode<synchronous>, transform_indices = @transform_5, window_bounds = array<i64: 1, 32>}, {pipeline_mode = #tpu.pipeline_mode<synchronous>, transform_indices = @transform_6, window_bounds = array<i64: 2, 32, 16>}, {pipeline_mode = #tpu.pipeline_mode<synchronous>, transform_indices = @transform_7, window_bounds = array<i64: 2, 1, 16>}, {pipeline_mode = #tpu.pipeline_mode<synchronous>, transform_indices = @transform_8, window_bounds = array<i64: 2, 32, 16>}, {pipeline_mode = #tpu.pipeline_mode<synchronous>, transform_indices = @transform_9, window_bounds = array<i64: 2, 1, 16>}, {pipeline_mode = #tpu.pipeline_mode<synchronous>, transform_indices = @transform_10, window_bounds = array<i64: 2, 32, 16>}, {pipeline_mode = #tpu.pipeline_mode<synchronous>, transform_indices = @transform_11, window_bounds = array<i64: 2, 1, 16>}, {pipeline_mode = #tpu.pipeline_mode<synchronous>, transform_indices = @transform_12, window_bounds = array<i64: 2, 16, 16>}, {pipeline_mode = #tpu.pipeline_mode<synchronous>, transform_indices = @transform_13, window_bounds = array<i64: 1, 16>}, {pipeline_mode = #tpu.pipeline_mode<synchronous>, transform_indices = @transform_14, window_bounds = array<i64: 2, 16, 16>}, {pipeline_mode = #tpu.pipeline_mode<synchronous>, transform_indices = @transform_15, window_bounds = array<i64: 1, 16>}, {pipeline_mode = #tpu.pipeline_mode<synchronous>, transform_indices = @transform_16, window_bounds = array<i64: 2, 16, 32>}, {pipeline_mode = #tpu.pipeline_mode<synchronous>, transform_indices = @transform_17, window_bounds = array<i64: 1, 32>}, {transform_indices = @transform_18, window_bounds = array<i64: 1, 8, 32>}, {transform_indices = @transform_19, window_bounds = array<i64: 1, 2, 8, 16>}, {transform_indices = @transform_20, window_bounds = array<i64: 1, 2, 16>}, {transform_indices = @transform_21, window_bounds = array<i64: 1, 2, 16>}]} {
    %c0 = arith.constant 0 : index
    %c0_0 = arith.constant 0 : index
    %c0_1 = arith.constant 0 : index
    %0 = vector.load %arg1[%c0, %c0_0, %c0_1] : memref<1x8x20xbf16, #tpu.memory_space<vmem>>, vector<1x8x20xbf16>
    %1 = vector.shape_cast %0 : vector<1x8x20xbf16> to vector<8x20xbf16>
    %c0_2 = arith.constant 0 : index
    %c0_3 = arith.constant 0 : index
    %2 = vector.load %arg3[%c0_2, %c0_3] : memref<20x32xbf16, #tpu.memory_space<vmem>>, vector<20x32xbf16>
    %cst = arith.constant dense<0.000000e+00> : vector<8x32xf32>
    %3 = tpu.matmul %1, %2, %cst {dimension_numbers = #tpu.dot_dimension_numbers<[1], [0], [0], [1], [0, 0, 1, 1], [], []>} : vector<8x20xbf16>, vector<20x32xbf16>, vector<8x32xf32> -> vector<8x32xf32>
    %c0_4 = arith.constant 0 : index
    %c0_5 = arith.constant 0 : index
    %4 = vector.load %arg4[%c0_4, %c0_5] : memref<1x32xf32, #tpu.memory_space<vmem>>, vector<1x32xf32>
    %5 = vector.broadcast %4 : vector<1x32xf32> to vector<8x32xf32>
    %6 = arith.addf %3, %5 : vector<8x32xf32>
    %7 = arith.mulf %6, %6 : vector<8x32xf32>
    %cst_6 = arith.constant dense<0.000000e+00> : vector<32xf32>
    %8 = vector.multi_reduction <add>, %7, %cst_6 [0] : vector<8x32xf32> to vector<32xf32>
    %9 = vector.shape_cast %8 : vector<32xf32> to vector<1x32xf32>
    %cst_7 = arith.constant 9.99999996E-13 : f32
    %10 = vector.broadcast %cst_7 : f32 to vector<1x32xf32>
    %11 = arith.addf %9, %10 : vector<1x32xf32>
    %12 = math.rsqrt %11 : vector<1x32xf32>
    %13 = vector.broadcast %12 : vector<1x32xf32> to vector<8x32xf32>
    %14 = arith.mulf %6, %13 : vector<8x32xf32>
    %c0_8 = arith.constant 0 : index
    %c0_9 = arith.constant 0 : index
    %c0_10 = arith.constant 0 : index
    %15 = vector.load %arg19[%c0_8, %c0_9, %c0_10] : memref<1x8x32xf32, #tpu.memory_space<vmem>>, vector<1x8x32xf32>
    %16 = vector.shape_cast %15 : vector<1x8x32xf32> to vector<8x32xf32>
    %17 = vector.shape_cast %14 : vector<8x32xf32> to vector<1x8x32xf32>
    tpu.vector_store %arg19[%c0_8, %c0_9, %c0_10], %17 {strides = array<i32>} : memref<1x8x32xf32, #tpu.memory_space<vmem>>, vector<1x8x32xf32>,
    %c0_11 = arith.constant 0 : index
    %c0_12 = arith.constant 0 : index
    %c0_13 = arith.constant 0 : index
    %18 = vector.load %arg2[%c0_11, %c0_12, %c0_13] : memref<1x8x6xbf16, #tpu.memory_space<vmem>>, vector<1x8x6xbf16>
    %19 = vector.shape_cast %18 : vector<1x8x6xbf16> to vector<8x6xbf16>
    %c0_14 = arith.constant 0 : index
    %c0_15 = arith.constant 0 : index
    %20 = vector.load %arg5[%c0_14, %c0_15] : memref<6x32xbf16, #tpu.memory_space<vmem>>, vector<6x32xbf16>
    %cst_16 = arith.constant dense<0.000000e+00> : vector<8x32xf32>
    %21 = tpu.matmul %19, %20, %cst_16 {dimension_numbers = #tpu.dot_dimension_numbers<[1], [0], [0], [1], [0, 0, 1, 1], [], []>} : vector<8x6xbf16>, vector<6x32xbf16>, vector<8x32xf32> -> vector<8x32xf32>
    %c0_17 = arith.constant 0 : index
    %c0_18 = arith.constant 0 : index
    %22 = vector.load %arg6[%c0_17, %c0_18] : memref<1x32xf32, #tpu.memory_space<vmem>>, vector<1x32xf32>
    %23 = vector.broadcast %22 : vector<1x32xf32> to vector<8x32xf32>
    %24 = arith.addf %21, %23 : vector<8x32xf32>
    %cst_19 = arith.constant 0.000000e+00 : f32
    %25 = vector.broadcast %cst_19 : f32 to vector<8x32xf32>
    %26 = arith.subf %25, %24 : vector<8x32xf32>
    %27 = math.exp %26 : vector<8x32xf32>
    %cst_20 = arith.constant 1.000000e+00 : f32
    %28 = vector.broadcast %cst_20 : f32 to vector<8x32xf32>
    %29 = arith.addf %28, %27 : vector<8x32xf32>
    %cst_21 = arith.constant 1.000000e+00 : f32
    %30 = vector.broadcast %cst_21 : f32 to vector<8x32xf32>
    %31 = arith.divf %30, %29 : vector<8x32xf32>
    %32 = arith.mulf %14, %31 : vector<8x32xf32>
    %33 = arith.truncf %32 : vector<8x32xf32> to vector<8x32xbf16>
    %34 = vector.shape_cast %33 : vector<8x32xbf16> to vector<1x8x32xbf16>
    %35 = vector.broadcast %34 : vector<1x8x32xbf16> to vector<2x8x32xbf16>
    %c0_22 = arith.constant 0 : index
    %c0_23 = arith.constant 0 : index
    %c0_24 = arith.constant 0 : index
    %36 = vector.load %arg7[%c0_22, %c0_23, %c0_24] : memref<2x32x16xbf16, #tpu.memory_space<vmem>>, vector<2x32x16xbf16>
    "tpu.trace_start"() <{level = 10 : i32, message = "hnd,hde->hne"}> : () -> ()
    %cst_25 = arith.constant dense<0.000000e+00> : vector<2x8x16xf32>
    %37 = tpu.matmul %35, %36, %cst_25 {dimension_numbers = #tpu.dot_dimension_numbers<[2], [1], [1], [2], [0, 0, 0, 1, 1, 2], [0], [0]>} : vector<2x8x32xbf16>, vector<2x32x16xbf16>, vector<2x8x16xf32> -> vector<2x8x16xf32>
    "tpu.trace_stop"() : () -> ()
    %c0_26 = arith.constant 0 : index
    %c0_27 = arith.constant 0 : index
    %c0_28 = arith.constant 0 : index
    %38 = vector.load %arg8[%c0_26, %c0_27, %c0_28] : memref<2x1x16xf32, #tpu.memory_space<vmem>>, vector<2x1x16xf32>
    %39 = vector.broadcast %38 : vector<2x1x16xf32> to vector<2x8x16xf32>
    %40 = arith.addf %37, %39 : vector<2x8x16xf32>
    %c0_29 = arith.constant 0 : index
    %c0_30 = arith.constant 0 : index
    %c0_31 = arith.constant 0 : index
    %41 = vector.load %arg9[%c0_29, %c0_30, %c0_31] : memref<2x32x16xbf16, #tpu.memory_space<vmem>>, vector<2x32x16xbf16>
    "tpu.trace_start"() <{level = 10 : i32, message = "hnd,hde->hne"}> : () -> ()
    %cst_32 = arith.constant dense<0.000000e+00> : vector<2x8x16xf32>
    %42 = tpu.matmul %35, %41, %cst_32 {dimension_numbers = #tpu.dot_dimension_numbers<[2], [1], [1], [2], [0, 0, 0, 1, 1, 2], [0], [0]>} : vector<2x8x32xbf16>, vector<2x32x16xbf16>, vector<2x8x16xf32> -> vector<2x8x16xf32>
    "tpu.trace_stop"() : () -> ()
    %c0_33 = arith.constant 0 : index
    %c0_34 = arith.constant 0 : index
    %c0_35 = arith.constant 0 : index
    %43 = vector.load %arg10[%c0_33, %c0_34, %c0_35] : memref<2x1x16xf32, #tpu.memory_space<vmem>>, vector<2x1x16xf32>
    %44 = vector.broadcast %43 : vector<2x1x16xf32> to vector<2x8x16xf32>
    %45 = arith.addf %42, %44 : vector<2x8x16xf32>
    %c0_36 = arith.constant 0 : index
    %c0_37 = arith.constant 0 : index
    %c0_38 = arith.constant 0 : index
    %46 = vector.load %arg11[%c0_36, %c0_37, %c0_38] : memref<2x32x16xbf16, #tpu.memory_space<vmem>>, vector<2x32x16xbf16>
    "tpu.trace_start"() <{level = 10 : i32, message = "hnd,hde->hne"}> : () -> ()
    %cst_39 = arith.constant dense<0.000000e+00> : vector<2x8x16xf32>
    %47 = tpu.matmul %35, %46, %cst_39 {dimension_numbers = #tpu.dot_dimension_numbers<[2], [1], [1], [2], [0, 0, 0, 1, 1, 2], [0], [0]>} : vector<2x8x32xbf16>, vector<2x32x16xbf16>, vector<2x8x16xf32> -> vector<2x8x16xf32>
    "tpu.trace_stop"() : () -> ()
    %c0_40 = arith.constant 0 : index
    %c0_41 = arith.constant 0 : index
    %c0_42 = arith.constant 0 : index
    %48 = vector.load %arg12[%c0_40, %c0_41, %c0_42] : memref<2x1x16xf32, #tpu.memory_space<vmem>>, vector<2x1x16xf32>
    %49 = vector.broadcast %48 : vector<2x1x16xf32> to vector<2x8x16xf32>
    %50 = arith.addf %47, %49 : vector<2x8x16xf32>
    %51 = arith.truncf %40 : vector<2x8x16xf32> to vector<2x8x16xbf16>
    %c0_43 = arith.constant 0 : index
    %c0_44 = arith.constant 0 : index
    %c0_45 = arith.constant 0 : index
    %52 = vector.load %arg13[%c0_43, %c0_44, %c0_45] : memref<2x16x16xbf16, #tpu.memory_space<vmem>>, vector<2x16x16xbf16>
    "tpu.trace_start"() <{level = 10 : i32, message = "hne,hef->hnf"}> : () -> ()
    %cst_46 = arith.constant dense<0.000000e+00> : vector<2x8x16xf32>
    %53 = tpu.matmul %51, %52, %cst_46 {dimension_numbers = #tpu.dot_dimension_numbers<[2], [1], [1], [2], [0, 0, 0, 1, 1, 2], [0], [0]>} : vector<2x8x16xbf16>, vector<2x16x16xbf16>, vector<2x8x16xf32> -> vector<2x8x16xf32>
    "tpu.trace_stop"() : () -> ()
    %c0_47 = arith.constant 0 : index
    %c0_48 = arith.constant 0 : index
    %54 = vector.load %arg14[%c0_47, %c0_48] : memref<1x16xf32, #tpu.memory_space<vmem>>, vector<1x16xf32>
    %55 = vector.shape_cast %54 : vector<1x16xf32> to vector<1x1x16xf32>
    %56 = vector.broadcast %55 : vector<1x1x16xf32> to vector<2x8x16xf32>
    %57 = arith.addf %53, %56 : vector<2x8x16xf32>
    %58 = arith.truncf %45 : vector<2x8x16xf32> to vector<2x8x16xbf16>
    %c0_49 = arith.constant 0 : index
    %c0_50 = arith.constant 0 : index
    %c0_51 = arith.constant 0 : index
    %59 = vector.load %arg15[%c0_49, %c0_50, %c0_51] : memref<2x16x16xbf16, #tpu.memory_space<vmem>>, vector<2x16x16xbf16>
    "tpu.trace_start"() <{level = 10 : i32, message = "hne,hef->hnf"}> : () -> ()
    %cst_52 = arith.constant dense<0.000000e+00> : vector<2x8x16xf32>
    %60 = tpu.matmul %58, %59, %cst_52 {dimension_numbers = #tpu.dot_dimension_numbers<[2], [1], [1], [2], [0, 0, 0, 1, 1, 2], [0], [0]>} : vector<2x8x16xbf16>, vector<2x16x16xbf16>, vector<2x8x16xf32> -> vector<2x8x16xf32>
    "tpu.trace_stop"() : () -> ()
    %c0_53 = arith.constant 0 : index
    %c0_54 = arith.constant 0 : index
    %61 = vector.load %arg16[%c0_53, %c0_54] : memref<1x16xf32, #tpu.memory_space<vmem>>, vector<1x16xf32>
    %62 = vector.shape_cast %61 : vector<1x16xf32> to vector<1x1x16xf32>
    %63 = vector.broadcast %62 : vector<1x1x16xf32> to vector<2x8x16xf32>
    %64 = arith.addf %60, %63 : vector<2x8x16xf32>
    %65 = arith.mulf %57, %64 : vector<2x8x16xf32>
    %66 = arith.truncf %65 : vector<2x8x16xf32> to vector<2x8x16xbf16>
    %c0_55 = arith.constant 0 : index
    %c0_56 = arith.constant 0 : index
    %c0_57 = arith.constant 0 : index
    %67 = vector.load %arg17[%c0_55, %c0_56, %c0_57] : memref<2x16x32xbf16, #tpu.memory_space<vmem>>, vector<2x16x32xbf16>
    "tpu.trace_start"() <{level = 10 : i32, message = "hnf,hfg->hng"}> : () -> ()
    %cst_58 = arith.constant dense<0.000000e+00> : vector<2x8x32xf32>
    %68 = tpu.matmul %66, %67, %cst_58 {dimension_numbers = #tpu.dot_dimension_numbers<[2], [1], [1], [2], [0, 0, 0, 1, 1, 2], [0], [0]>} : vector<2x8x16xbf16>, vector<2x16x32xbf16>, vector<2x8x32xf32> -> vector<2x8x32xf32>
    "tpu.trace_stop"() : () -> ()
    %c0_59 = arith.constant 0 : index
    %c0_60 = arith.constant 0 : index
    %69 = vector.load %arg18[%c0_59, %c0_60] : memref<1x32xf32, #tpu.memory_space<vmem>>, vector<1x32xf32>
    %70 = vector.shape_cast %69 : vector<1x32xf32> to vector<1x1x32xf32>
    %71 = vector.broadcast %70 : vector<1x1x32xf32> to vector<2x8x32xf32>
    %72 = arith.addf %68, %71 : vector<2x8x32xf32>
    %cst_61 = arith.constant 0.000000e+00 : f32
    %73 = vector.broadcast %cst_61 : f32 to vector<2x8x32xf32>
    %74 = arith.subf %73, %72 : vector<2x8x32xf32>
    %75 = math.exp %74 : vector<2x8x32xf32>
    %cst_62 = arith.constant 1.000000e+00 : f32
    %76 = vector.broadcast %cst_62 : f32 to vector<2x8x32xf32>
    %77 = arith.addf %76, %75 : vector<2x8x32xf32>
    %cst_63 = arith.constant 1.000000e+00 : f32
    %78 = vector.broadcast %cst_63 : f32 to vector<2x8x32xf32>
    %79 = arith.divf %78, %77 : vector<2x8x32xf32>
    %80 = vector.extract_strided_slice %79 {offsets = [0, 0, 0], sizes = [2, 8, 16], strides = [1, 1, 1]} : vector<2x8x32xf32> to vector<2x8x16xf32>
    %81 = arith.mulf %40, %80 : vector<2x8x16xf32>
    %82 = arith.truncf %81 : vector<2x8x16xf32> to vector<2x8x16xbf16>
    %83 = vector.extract_strided_slice %79 {offsets = [0, 0, 16], sizes = [2, 8, 16], strides = [1, 1, 1]} : vector<2x8x32xf32> to vector<2x8x16xf32>
    %84 = arith.mulf %45, %83 : vector<2x8x16xf32>
    %85 = arith.truncf %84 : vector<2x8x16xf32> to vector<2x8x16xbf16>
    "tpu.trace_start"() <{level = 10 : i32, message = "hne,hme->hnm"}> : () -> ()
    %cst_64 = arith.constant dense<0.000000e+00> : vector<2x8x8xf32>
    %86 = tpu.matmul %82, %85, %cst_64 {dimension_numbers = #tpu.dot_dimension_numbers<[2], [2], [1], [1], [0, 0, 0, 1, 1, 1], [0], [0]>} : vector<2x8x16xbf16>, vector<2x8x16xbf16>, vector<2x8x8xf32> -> vector<2x8x8xf32>
    "tpu.trace_stop"() : () -> ()
    %cst_65 = arith.constant 2.500000e-01 : f32
    %87 = vector.broadcast %cst_65 : f32 to vector<2x8x8xf32>
    %88 = arith.mulf %86, %87 : vector<2x8x8xf32>
    %cst_66 = arith.constant dense<0xFF800000> : vector<2x8xf32>
    %89 = vector.multi_reduction <maximumf>, %88, %cst_66 [2] : vector<2x8x8xf32> to vector<2x8xf32>
    %90 = vector.shape_cast %89 : vector<2x8xf32> to vector<2x8x1xf32>
    %91 = vector.broadcast %90 : vector<2x8x1xf32> to vector<2x8x8xf32>
    %92 = arith.subf %88, %91 : vector<2x8x8xf32>
    %93 = math.exp %92 : vector<2x8x8xf32>
    %cst_67 = arith.constant dense<0.000000e+00> : vector<2x8xf32>
    %94 = vector.multi_reduction <add>, %93, %cst_67 [2] : vector<2x8x8xf32> to vector<2x8xf32>
    %95 = vector.shape_cast %94 : vector<2x8xf32> to vector<2x8x1xf32>
    %96 = tpu.reciprocal %95 {approx = true} : vector<2x8x1xf32> -> vector<2x8x1xf32>
    %97 = vector.broadcast %96 : vector<2x8x1xf32> to vector<2x8x8xf32>
    %98 = arith.mulf %93, %97 : vector<2x8x8xf32>
    %99 = arith.truncf %98 : vector<2x8x8xf32> to vector<2x8x8xbf16>
    %100 = arith.truncf %50 : vector<2x8x16xf32> to vector<2x8x16xbf16>
    "tpu.trace_start"() <{level = 10 : i32, message = "hnm,hme->hne"}> : () -> ()
    %cst_68 = arith.constant dense<0.000000e+00> : vector<2x8x16xf32>
    %101 = tpu.matmul %99, %100, %cst_68 {dimension_numbers = #tpu.dot_dimension_numbers<[2], [1], [1], [2], [0, 0, 0, 1, 1, 2], [0], [0]>} : vector<2x8x8xbf16>, vector<2x8x16xbf16>, vector<2x8x16xf32> -> vector<2x8x16xf32>
    "tpu.trace_stop"() : () -> ()
    %c0_69 = arith.constant 0 : index
    %c0_70 = arith.constant 0 : index
    %c0_71 = arith.constant 0 : index
    %c0_72 = arith.constant 0 : index
    %102 = vector.load %arg20[%c0_69, %c0_70, %c0_71, %c0_72] : memref<1x2x8x16xf32, #tpu.memory_space<vmem>>, vector<1x2x8x16xf32>
    %103 = vector.shape_cast %102 : vector<1x2x8x16xf32> to vector<2x8x16xf32>
    %104 = vector.shape_cast %101 : vector<2x8x16xf32> to vector<1x2x8x16xf32>
    tpu.vector_store %arg20[%c0_69, %c0_70, %c0_71, %c0_72], %104 {strides = array<i32>} : memref<1x2x8x16xf32, #tpu.memory_space<vmem>>, vector<1x2x8x16xf32>,
    %cst_73 = arith.constant dense<0.000000e+00> : vector<2x16xf32>
    %105 = vector.multi_reduction <add>, %101, %cst_73 [1] : vector<2x8x16xf32> to vector<2x16xf32>
    %c0_74 = arith.constant 0 : index
    %c0_75 = arith.constant 0 : index
    %c0_76 = arith.constant 0 : index
    %106 = vector.load %arg21[%c0_74, %c0_75, %c0_76] : memref<1x2x16xf32, #tpu.memory_space<vmem>>, vector<1x2x16xf32>
    %107 = vector.shape_cast %106 : vector<1x2x16xf32> to vector<2x16xf32>
    %108 = vector.shape_cast %105 : vector<2x16xf32> to vector<1x2x16xf32>
    tpu.vector_store %arg21[%c0_74, %c0_75, %c0_76], %108 {strides = array<i32>} : memref<1x2x16xf32, #tpu.memory_space<vmem>>, vector<1x2x16xf32>,
    %109 = arith.mulf %101, %101 : vector<2x8x16xf32>
    %cst_77 = arith.constant dense<0.000000e+00> : vector<2x16xf32>
    %110 = vector.multi_reduction <add>, %109, %cst_77 [1] : vector<2x8x16xf32> to vector<2x16xf32>
    %c0_78 = arith.constant 0 : index
    %c0_79 = arith.constant 0 : index
    %c0_80 = arith.constant 0 : index
    %111 = vector.load %arg22[%c0_78, %c0_79, %c0_80] : memref<1x2x16xf32, #tpu.memory_space<vmem>>, vector<1x2x16xf32>
    %112 = vector.shape_cast %111 : vector<1x2x16xf32> to vector<2x16xf32>
    %113 = vector.shape_cast %110 : vector<2x16xf32> to vector<1x2x16xf32>
    tpu.vector_store %arg22[%c0_78, %c0_79, %c0_80], %113 {strides = array<i32>} : memref<1x2x16xf32, #tpu.memory_space<vmem>>, vector<1x2x16xf32>,
    return
  }
  func.func @transform_0(%arg0: i32) -> (i32, i32, i32) {
    %c0_i32 = arith.constant 0 : i32
    %c0_i32_0 = arith.constant 0 : i32
    %c0_i32_1 = arith.constant 0 : i32
    return %arg0, %c0_i32, %c0_i32_0 : i32, i32, i32
  }
  func.func @transform_1(%arg0: i32) -> (i32, i32, i32) {
    %c0_i32 = arith.constant 0 : i32
    %c0_i32_0 = arith.constant 0 : i32
    %c0_i32_1 = arith.constant 0 : i32
    return %arg0, %c0_i32, %c0_i32_0 : i32, i32, i32
  }
  func.func @transform_2(%arg0: i32) -> (i32, i32) {
    %c0_i32 = arith.constant 0 : i32
    %c0_i32_0 = arith.constant 0 : i32
    %c0_i32_1 = arith.constant 0 : i32
    return %c0_i32, %c0_i32_0 : i32, i32
  }
  func.func @transform_3(%arg0: i32) -> (i32, i32) {
    %c0_i32 = arith.constant 0 : i32
    %c0_i32_0 = arith.constant 0 : i32
    %c0_i32_1 = arith.constant 0 : i32
    return %c0_i32, %c0_i32_0 : i32, i32
  }
  func.func @transform_4(%arg0: i32) -> (i32, i32) {
    %c0_i32 = arith.constant 0 : i32
    %c0_i32_0 = arith.constant 0 : i32
    %c0_i32_1 = arith.constant 0 : i32
    return %c0_i32, %c0_i32_0 : i32, i32
  }
  func.func @transform_5(%arg0: i32) -> (i32, i32) {
    %c0_i32 = arith.constant 0 : i32
    %c0_i32_0 = arith.constant 0 : i32
    %c0_i32_1 = arith.constant 0 : i32
    return %c0_i32, %c0_i32_0 : i32, i32
  }
  func.func @transform_6(%arg0: i32) -> (i32, i32, i32) {
    %c0_i32 = arith.constant 0 : i32
    %c0_i32_0 = arith.constant 0 : i32
    %c0_i32_1 = arith.constant 0 : i32
    %c0_i32_2 = arith.constant 0 : i32
    return %c0_i32, %c0_i32_0, %c0_i32_1 : i32, i32, i32
  }
  func.func @transform_7(%arg0: i32) -> (i32, i32, i32) {
    %c0_i32 = arith.constant 0 : i32
    %c0_i32_0 = arith.constant 0 : i32
    %c0_i32_1 = arith.constant 0 : i32
    %c0_i32_2 = arith.constant 0 : i32
    return %c0_i32, %c0_i32_0, %c0_i32_1 : i32, i32, i32
  }
  func.func @transform_8(%arg0: i32) -> (i32, i32, i32) {
    %c0_i32 = arith.constant 0 : i32
    %c0_i32_0 = arith.constant 0 : i32
    %c0_i32_1 = arith.constant 0 : i32
    %c0_i32_2 = arith.constant 0 : i32
    return %c0_i32, %c0_i32_0, %c0_i32_1 : i32, i32, i32
  }
  func.func @transform_9(%arg0: i32) -> (i32, i32, i32) {
    %c0_i32 = arith.constant 0 : i32
    %c0_i32_0 = arith.constant 0 : i32
    %c0_i32_1 = arith.constant 0 : i32
    %c0_i32_2 = arith.constant 0 : i32
    return %c0_i32, %c0_i32_0, %c0_i32_1 : i32, i32, i32
  }
  func.func @transform_10(%arg0: i32) -> (i32, i32, i32) {
    %c0_i32 = arith.constant 0 : i32
    %c0_i32_0 = arith.constant 0 : i32
    %c0_i32_1 = arith.constant 0 : i32
    %c0_i32_2 = arith.constant 0 : i32
    return %c0_i32, %c0_i32_0, %c0_i32_1 : i32, i32, i32
  }
  func.func @transform_11(%arg0: i32) -> (i32, i32, i32) {
    %c0_i32 = arith.constant 0 : i32
    %c0_i32_0 = arith.constant 0 : i32
    %c0_i32_1 = arith.constant 0 : i32
    %c0_i32_2 = arith.constant 0 : i32
    return %c0_i32, %c0_i32_0, %c0_i32_1 : i32, i32, i32
  }
  func.func @transform_12(%arg0: i32) -> (i32, i32, i32) {
    %c0_i32 = arith.constant 0 : i32
    %c0_i32_0 = arith.constant 0 : i32
    %c0_i32_1 = arith.constant 0 : i32
    %c0_i32_2 = arith.constant 0 : i32
    return %c0_i32, %c0_i32_0, %c0_i32_1 : i32, i32, i32
  }
  func.func @transform_13(%arg0: i32) -> (i32, i32) {
    %c0_i32 = arith.constant 0 : i32
    %c0_i32_0 = arith.constant 0 : i32
    %c0_i32_1 = arith.constant 0 : i32
    return %c0_i32, %c0_i32_0 : i32, i32
  }
  func.func @transform_14(%arg0: i32) -> (i32, i32, i32) {
    %c0_i32 = arith.constant 0 : i32
    %c0_i32_0 = arith.constant 0 : i32
    %c0_i32_1 = arith.constant 0 : i32
    %c0_i32_2 = arith.constant 0 : i32
    return %c0_i32, %c0_i32_0, %c0_i32_1 : i32, i32, i32
  }
  func.func @transform_15(%arg0: i32) -> (i32, i32) {
    %c0_i32 = arith.constant 0 : i32
    %c0_i32_0 = arith.constant 0 : i32
    %c0_i32_1 = arith.constant 0 : i32
    return %c0_i32, %c0_i32_0 : i32, i32
  }
  func.func @transform_16(%arg0: i32) -> (i32, i32, i32) {
    %c0_i32 = arith.constant 0 : i32
    %c0_i32_0 = arith.constant 0 : i32
    %c0_i32_1 = arith.constant 0 : i32
    %c0_i32_2 = arith.constant 0 : i32
    return %c0_i32, %c0_i32_0, %c0_i32_1 : i32, i32, i32
  }
  func.func @transform_17(%arg0: i32) -> (i32, i32) {
    %c0_i32 = arith.constant 0 : i32
    %c0_i32_0 = arith.constant 0 : i32
    %c0_i32_1 = arith.constant 0 : i32
    return %c0_i32, %c0_i32_0 : i32, i32
  }
  func.func @transform_18(%arg0: i32) -> (i32, i32, i32) {
    %c0_i32 = arith.constant 0 : i32
    %c0_i32_0 = arith.constant 0 : i32
    %c0_i32_1 = arith.constant 0 : i32
    return %arg0, %c0_i32, %c0_i32_0 : i32, i32, i32
  }
  func.func @transform_19(%arg0: i32) -> (i32, i32, i32, i32) {
    %c0_i32 = arith.constant 0 : i32
    %c0_i32_0 = arith.constant 0 : i32
    %c0_i32_1 = arith.constant 0 : i32
    %c0_i32_2 = arith.constant 0 : i32
    return %arg0, %c0_i32, %c0_i32_0, %c0_i32_1 : i32, i32, i32, i32
  }
  func.func @transform_20(%arg0: i32) -> (i32, i32, i32) {
    %c0_i32 = arith.constant 0 : i32
    %c0_i32_0 = arith.constant 0 : i32
    %c0_i32_1 = arith.constant 0 : i32
    return %arg0, %c0_i32, %c0_i32_0 : i32, i32, i32
  }
  func.func @transform_21(%arg0: i32) -> (i32, i32, i32) {
    %c0_i32 = arith.constant 0 : i32
    %c0_i32_0 = arith.constant 0 : i32
    %c0_i32_1 = arith.constant 0 : i32
    return %arg0, %c0_i32, %c0_i32_0 : i32, i32, i32
  }
}

</mosaic_0001>

<bundles_post_ra>
// kernel: encoder_image_precomp_self_attn.3
= control target key start
LH: loop header
LB: loop body
LE: loop exit
PB: predicated region body
PF: predicated region fallthrough
CT: control target
= control target key end

     0   :  { %9 = vsyncpa [#allocation3], 0  ;;  %s582_s0 = inlined_call_operand.vmem [shape: f32[2,8,32], index: 0, kind: input, shape index: {}]   ;;  %s583_s1 = inlined_call_operand.vmem [shape: f32[2,8,32], index: 1, kind: input, shape index: {}]   ;;  %s584_s2 = inlined_call_operand.vmem [shape: f32[1,32], index: 2, kind: input, shape index: {}]   ;;  %s585_s3 = inlined_call_operand.vmem [shape: f32[1,32], index: 3, kind: input, shape index: {}]   ;;  %s586_s4 = inlined_call_operand.hbm [shape: f32[2,8,32], index: 4, kind: output, shape index: {}]  }
   0x1   :  { %11 = vsyncpa [#allocation3 + $0x1], 0  ;;  %s471_s15 = smov 0   ;;  %s473_s16 = smov 0  }
   0x2   :  { %s475_s17 = smov 0   ;;  %s477_s18 = smov 0  }
   0x3 LB: > { %s492_s19 = sadd.s32 4294967295, %s443_s18   ;;  %s327_s20 = sadd.s32 4294967294, %s443_s18   ;;  %s443_s18 = sphi %s477_s18, %s592_s18   ;;  %s439_s17 = sphi %s475_s17, %s591_s17   ;;  %s435_s16 = sphi %s473_s16, %s590_s16   ;;  %s431_s15 = sphi %s471_s15, %s589_s15  }
   0x4   : > { %s496_s21 = sadd.s32 1, %s443_s18   ;;  %s118_s22 = sadd.s32 1, %s439_s17 }
   0x5   : > { %s115_s23 = ssub.s32 %s443_s18, %s496_s21  ;;  %p128_p0 = scmp.ne.s32.totalorder %s439_s17, %s435_s16 }
   0x6   : > { %p116_p1 = scmp.eq.s32.totalorder %s115_s23, 0  ;;  %p129_p2 = scmp.eq.s32.totalorder %s492_s19, 1 }
   0x7   : > { %p134_p3 = scmp.ne.s32.totalorder %s435_s16, %s431_s15  ;;  %p135_p4 = scmp.eq.s32.totalorder %s327_s20, 1 }
   0x8   : > { %s507_s24 = scalar_select %p116_p1, %s439_s17, %s118_s22  }
   0x9   : > { %p509_p5 = por %p129_p2, %p128_p0  ;;  %p513_p6 = por %p135_p4, %p134_p3 }
   0xa   : > { %p330_p7 = scmp.ge.s32.totalorder %s443_s18, 1  ;;  %p173_p8 = scmp.lt.s32.totalorder %s443_s18, 3 }
   0xc   : > { %p174_p9 = pnand %p330_p7, %p173_p8 }
   0xd   : > { %p202_p10 = scmp.lt.s32.totalorder (!%p174_p9), %s492_s19, 1  ;;  %v334_v0 = vld [vmem:[%s584_s2] ss:$0 sm:$0xff] (!%p174_p9)  ;;  %vm230_vm0 = vcmask (!%p174_p9), 261120   ;;  %s199_s13 = sand.u32 (!%p174_p9), 1, %s435_s16  }
   0xe   : > { %177 = sbr.rel (%p174_p9) target bundleno = 77 (0x4d), region = 36  ;;  %v335_v4 = vld [vmem:[%s585_s3] ss:$0 sm:$0xff] (!%p174_p9)  ;;  %s331_s14 = sshll.u32 (!%p174_p9), %s199_s13, 3 }
   0xf   : > { %s201_s20 = scalar_lea.vmem (!%p174_p9), [#allocation2], %s331_s14  ;;  %s337_s23 = sshll.u32 (!%p174_p9), %s492_s19, 7 }
  0x10   : > { %s256_s22 = sshll.u32 (!%p174_p9), %s201_s20, 4  ;;  %s541_s29 = scalar_lea.hbm (!%p174_p9), %s586_s4, %s337_s23  ;;  %s536_s22 = int_to_ptr.vmem [resolvable:$true] %s256_s22 }
  0x11   : > { %s243_s30 = scalar_lea.sflag (!%p174_p9), [#allocation3], %s199_s13  ;;  %s381_s5 = scalar_lea.vmem (!%p174_p9), %s536_s22, 128 }
  0x12   : > { %p382_p11 = scmp.ne.s32.totalorder (!%p174_p9), %s536_s22, %s381_s5 }
  0x14   : > { %p383_p12 = pnand (!%p174_p9), %p382_p11, %p509_p5 }
  0x15   : > { %s203_s27 = scalar_select %p202_p10, %s492_s19, 1 }
  0x16   : > { %p384_p13 = pneg %p383_p12  ;;  %s445_s19 = smov [#allocation2]  }
  0x17   : > { %s332_s28 = sshll.u32 %s203_s27, 3  ;;  %s385_s6 = sshll.u32 %s445_s19, 4  ;;  %s386_s6 = int_to_ptr.vmem [resolvable:$false] %s385_s6 }
  0x18   : > { %s205_s7 = scalar_lea.vmem %s582_s0, %s332_s28  ;;  %s209_s10 = scalar_lea.vmem %s583_s1, %s332_s28 }
  0x19   : > { %v210_v1 = vld [vmem:[%s205_s7] sm:$0xff]  ;;  %s387_s7 = scalar_lea.vmem %s386_s6, 256  ;;  %p388_p0 = scmp.lt.s32.totalorder %s536_s22, %s386_s6 }
  0x1a   : > { %v211_v2 = vld [vmem:[%s209_s10] sm:$0xff]  ;;  %p389_p1 = scmp.lt.s32.totalorder %s387_s7, %s381_s5 }
  0x1b   : > { %v219_v3 = vmul.f32 %v334_v0, %v211_v2 }
  0x1c   : > { %p390_p2 = por %p389_p1, %p388_p0 }
  0x1d   : > { %v220_v5 = vadd.f32 %v219_v3, %v210_v1 }
  0x1e   : > { %p391_p3 = pnand %p390_p2, %p384_p13 }
  0x1f   : > { %v228_v6 = vadd.f32 %v335_v4, %v220_v5 }
  0x21   : > { %v229_v7 = vmul.f32 %v228_v6, %v228_v6 }
  0x23   : > { %v231_v8 = vsel %vm230_vm0, %v229_v7, 0.0 }
  0x24   : > { %v232_v9 = vrot.slane %v231_v8, 4 }
  0x26   : > { %v233_v10 = vadd.f32 %v232_v9, %v231_v8 }
  0x28   : > { %v234_v11 = vrot.slane %v233_v10, 2 }
  0x2a   : > { %v235_v12 = vadd.f32 %v234_v11, %v233_v10 }
  0x2c   : > { %v236_v13 = vrot.slane %v235_v12, 1 }
  0x2e   : > { %v237_v14 = vadd.f32 %v236_v13, %v235_v12 }
  0x30   : > { %v238_v15 = vadd.f32 1e-12, %v237_v14 }
  0x32   : > { %379 = vrsqrt.f32 %v238_v15 }
  0x3c   : > { %v380_v16 = vpop.eup %379 }
  0x3d   : > { %v240_v17 = vmul.f32 %v380_v16, %v228_v6 }
  0x3f   : > { %241 = vst.msk [vmem:[%s201_s20] sm:$0xff] %vm230_vm0, %v240_v17 }
  0x40   : > { %394 = shalt.err (!%p391_p3)
}
  0x41   : > { %s395_s8 = scalar_lea.hbm %s541_s29, 128  ;;  %s399_s11 = scalar_lea.hbm %s586_s4, 256 }
  0x42   : > { %p396_p4 = scmp.ne.s32.totalorder %s541_s29, %s395_s8  ;;  %p400_p9 = scmp.lt.u32.totalorder %s541_s29, %s586_s4 }
  0x43   : > { %p401_p10 = scmp.lt.u32.totalorder %s399_s11, %s395_s8  ;;  %p403_p12 = scmp.lt.u32.totalorder %s395_s8, %s541_s29 }
  0x44   : > { %p397_p7 = pnand %p396_p4, %p509_p5 }
  0x45   : > { %p402_p11 = por %p401_p10, %p400_p9 }
  0x46   : > { %p398_p8 = pneg %p397_p7 }
  0x47   : > { %p404_p13 = por %p403_p12, %p402_p11 }
  0x49   : > { %p405_p0 = pnand %p404_p13, %p398_p8 }
  0x4b   : > { %408 = shalt.err (!%p405_p0)
}
  0x4c   : > { %340 = dma.vmem_to_hbm [thread:$0]  (%p509_p5), %s536_s22, 128, %s541_s29, %s243_s30  }
  0x4d PF: > { %p346_p1 = scmp.ge.s32.totalorder %s443_s18, 2  ;;  %s268_s14 = sand.u32 1, %s431_s15  }
  0x4e   : > { %s269_s20 = scalar_lea.sflag [#allocation3], %s268_s14 }
  0x4f   : > { %p343_p2 = pnand %p346_p1, %p513_p6 }
  0x51   : > { %426 = dma.done.wait (!%p343_p2), %s269_s20, 128  }
  0x52   : > { %428 = vsyncadd (!%p343_p2), %s269_s20, 4294967168  ;;  %p14_p3 = scmp.ge.s32.totalorder %s496_s21, 4   ;;  %s589_s15 = smov %s435_s16 }
  0x53   : > { %s590_s16 = smov %s439_s17  ;;  %s591_s17 = smov %s507_s24 }
  0x54   : > { %s592_s18 = smov %s496_s21  ;;  %16 = sbr.rel (!%p14_p3) target bundleno = 3 (0x3), region = 74 }
  0x5b   :  { %274 = vsyncpa [#allocation3], 1 }
  0x5c   :  { %276 = vsyncpa [#allocation3 + $0x1], 1 }

// kernel: encoder_image_precomp_self_attn.2
= control target key start
LH: loop header
LB: loop body
LE: loop exit
PB: predicated region body
PF: predicated region fallthrough
CT: control target
= control target key end

     0   :  { %s2663_s0 = inlined_call_operand.vmem [shape: bf16[2,8,20], index: 0, kind: input, shape index: {}]   ;;  %s2664_s1 = inlined_call_operand.vmem [shape: bf16[2,8,6], index: 1, kind: input, shape index: {}]   ;;  %s2665_s2 = inlined_call_operand.vmem [shape: bf16[20,32], index: 2, kind: input, shape index: {}]   ;;  %s2666_s3 = inlined_call_operand.vmem [shape: f32[1,32], index: 3, kind: input, shape index: {}]   ;;  %s2667_s4 = inlined_call_operand.vmem [shape: bf16[6,32], index: 4, kind: input, shape index: {}]   ;;  %s2668_s5 = inlined_call_operand.vmem [shape: f32[1,32], index: 5, kind: input, shape index: {}]   ;;  %s2669_s6 = inlined_call_operand.vmem [shape: bf16[2,32,16], index: 6, kind: input, shape index: {}]   ;;  %s2670_s7 = inlined_call_operand.vmem [shape: f32[2,1,16], index: 7, kind: input, shape index: {}]   ;;  %s2671_s8 = inlined_call_operand.vmem [shape: bf16[2,32,16], index: 8, kind: input, shape index: {}]   ;;  %s2672_s9 = inlined_call_operand.vmem [shape: f32[2,1,16], index: 9, kind: input, shape index: {}]   ;;  %s2673_s10 = inlined_call_operand.vmem [shape: bf16[2,32,16], index: 10, kind: input, shape index: {}]   ;;  %s2674_s11 = inlined_call_operand.vmem [shape: f32[2,1,16], index: 11, kind: input, shape index: {}]   ;;  %s2675_s12 = inlined_call_operand.vmem [shape: bf16[2,16,16], index: 12, kind: input, shape index: {}]   ;;  %s2676_s13 = inlined_call_operand.vmem [shape: f32[1,16], index: 13, kind: input, shape index: {}]   ;;  %s2677_s14 = inlined_call_operand.vmem [shape: bf16[2,16,16], index: 14, kind: input, shape index: {}]   ;;  %s2678_s15 = inlined_call_operand.vmem [shape: f32[1,16], index: 15, kind: input, shape index: {}]   ;;  %s2679_s16 = inlined_call_operand.vmem [shape: bf16[2,16,32], index: 16, kind: input, shape index: {}]   ;;  %s2680_s17 = inlined_call_operand.vmem [shape: f32[1,32], index: 17, kind: input, shape index: {}]   ;;  %s2681_s18 = inlined_call_operand.vmem [shape: f32[2,8,32], index: 18, kind: output, shape index: {0}]   ;;  %s2682_s19 = inlined_call_operand.vmem [shape: f32[2,2,8,16], index: 19, kind: output, shape index: {1}]   ;;  %s2683_s20 = inlined_call_operand.vmem [shape: f32[2,2,16], index: 20, kind: output, shape index: {2}]   ;;  %s2684_s21 = inlined_call_operand.vmem [shape: f32[2,2,16], index: 21, kind: output, shape index: {3}]  }
   0x1   :  { %2686 = sst [smem:[#allocation2_spill]] %s2663_s0 }
   0x2   :  { %2687 = sst [smem:[#allocation3_spill]] %s2664_s1 }
   0x3   :  { %2688 = sst [smem:[#allocation4_spill]] %s2665_s2  ;;  %s2415_s2 = smov 0  }
   0x4   :  { %2689 = sst [smem:[#allocation5_spill]] %s2666_s3 }
   0x5   :  { %2690 = sst [smem:[#allocation6_spill]] %s2667_s4 }
   0x6   :  { %2691 = sst [smem:[#allocation7_spill]] %s2668_s5 }
   0x7 LB: > { %s2012_s25 = sadd.s32 4294967295, %s2300_s2   ;;  %p2016_p0 = scmp.ge.s32.totalorder %s2300_s2, 1  ;;  %s2300_s2 = sphi %s2415_s2, %s32_s2  }
   0x8   : > { %p602_p1 = scmp.lt.s32.totalorder %s2300_s2, 3 }
   0xa   : > { %p603_p2 = pnand %p2016_p0, %p602_p1 }
   0xb   : > { %s2692_s3 = sld [smem:[#allocation4_spill]] (!%p603_p2)  ;;  %v2302_v1 = vmov (!%p603_p2), 0.0   ;;  %s2693_s0 = sld [smem:[#allocation6_spill]] (!%p603_p2)  ;;  %vm797_vm0 = vcmask (!%p603_p2), 1042432   ;;  %vm727_vm1 = vcmask (!%p603_p2), 1041408   ;;  %vm793_vm2 = vcmask (!%p603_p2), 48128  }
   0xc   : > { %606 = sbr.rel (%p603_p2) target bundleno = 1847 (0x737), region = 92  ;;  %2119 = vmatprep.subr.bf16.mxu0 (!%p603_p2), %v2302_v1  ;;  %2127 = vmatprep.subr.bf16.mxu1 (!%p603_p2), %v2302_v1  ;;  %p677_p3 = scmp.lt.s32.totalorder (!%p603_p2), %s2012_s25, 1  ;;  %vm2303_vm3 = vmmov (!%p603_p2), 0   ;;  %vm723_vm4 = vcmask (!%p603_p2), 162816   ;;  %v2254_v8 = vld [vmem:[%s2669_s6] sm:$0xff] (!%p603_p2)   ;;  %v2255_v9 = vld [vmem:[%s2669_s6 + $0x10] sm:$0xff] (!%p603_p2)  }
   0xd   : > { %2129 = vmatprep.mubr.msk.bf16.mxu1 (!%p603_p2), %vm2303_vm3, %v2302_v1  ;;  %2123 = vmatprep.mubr.msk.bf16.mxu0 (!%p603_p2), %vm2303_vm3, %v2302_v1  ;;  %s2694_s1 = sld [smem:[#allocation3_spill]] (!%p603_p2)  ;;  %s2695_s28 = sld [smem:[#allocation2_spill]] (!%p603_p2)  ;;  %v2256_v10 = vld [vmem:[%s2669_s6 + $0x8] sm:$0xff] (!%p603_p2)   ;;  %v2257_v11 = vld [vmem:[%s2669_s6 + $0x18] sm:$0xff] (!%p603_p2)   ;;  %vm772_vm5 = vcmask (!%p603_p2), 261120   ;;  %v2258_v41 = vld [vmem:[%s2671_s8] sm:$0xff] (!%p603_p2)  }
   0xe   : > { %s2697_s4 = sld [smem:[#allocation5_spill]] (!%p603_p2)  ;;  %v2259_v42 = vld [vmem:[%s2671_s8 + $0x10] sm:$0xff] (!%p603_p2)   ;;  %v2260_v44 = vld [vmem:[%s2671_s8 + $0x8] sm:$0xff] (!%p603_p2)   ;;  %v2261_v45 = vld [vmem:[%s2671_s8 + $0x18] sm:$0xff] (!%p603_p2)   ;;  %vm1249_vm6 = vcmask (!%p603_p2), 130048   ;;  %vm1718_vm7 = vcmask (!%p603_p2), 1043456  }
   0xf   : > { %v2262_v46 = vld [vmem:[%s2673_s10] sm:$0xff] (!%p603_p2)   ;;  %v2263_v47 = vld [vmem:[%s2673_s10 + $0x10] sm:$0xff] (!%p603_p2)   ;;  %v2264_v48 = vld [vmem:[%s2673_s10 + $0x8] sm:$0xff] (!%p603_p2)   ;;  %vm1688_vm8 = vcmask (!%p603_p2), 64512   ;;  %vm1826_vm9 = vcmask (!%p603_p2), 1041409   ;;  %vm1829_vm10 = vcmask (!%p603_p2), 123904  }
  0x10   : > { %v2265_v49 = vld [vmem:[%s2673_s10 + $0x18] sm:$0xff] (!%p603_p2)   ;;  %v2266_v50 = vld [vmem:[%s2675_s12] sm:$0xff] (!%p603_p2)   ;;  %v2267_v51 = vld [vmem:[%s2675_s12 + $0x8] sm:$0xff] (!%p603_p2)  }
  0x11   : > { %v2252_v0 = vld [vmem:[%s2692_s3] sm:$0xff] (!%p603_p2)   ;;  %v2253_v4 = vld [vmem:[%s2692_s3 + $0x8] ss:$0 sps:$4 sm:$0x33] (!%p603_p2)  }
  0x12   : > { %v785_v2 = vld [vmem:[%s2693_s0] sm:$0x7] (!%p603_p2)  ;;  %2120 = vmatpush3.bf16.msra.mxu0 (!%p603_p2), %v2252_v0  ;;  %v729_v5 = vsel (!%p603_p2), %vm727_vm1, %v2253_v4, 0  ;;  %v2269_v63 = vld [vmem:[%s2677_s14 + $0x8] sm:$0xff] (!%p603_p2)   ;;  %s2304_s0 = smov (!%p603_p2), 112  }
  0x13   : > { %v799_v3 = vsel %vm797_vm0, %v785_v2, 0  ;;  %2121 = vmatprep.subr.bf16.mxu0 %v2302_v1  ;;  %s2699_s25 = smov (!%p677_p3, %s2012_s25), 1  ;;  %v2030_v52 = vld [vmem:[%s2670_s7] ss:$0 sm:$0xff]  ;;  %v2031_v53 = vld [vmem:[%s2670_s7 + $0x1] ss:$0 sm:$0xff] }
  0x14   : > { %2128 = vmatpush3.bf16.msra.mxu1 %v799_v3  ;;  %s2017_s5 = sshll.u32 %s2699_s25, 2  ;;  %v2024_v13 = vld [vmem:[%s2697_s4] ss:$0 sm:$0xff]  ;;  %s2019_s30 = sshll.u32 %s2699_s25, 3 }
  0x15   : > { %2133 = vmatprep.subr.bf16.mxu1 %v2302_v1  ;;  %s684_s24 = scalar_lea.vmem %s2694_s1, %s2017_s5  ;;  %s680_s29 = scalar_lea.vmem %s2695_s28, %s2017_s5  ;;  %v2268_v62 = vld [vmem:[%s2677_s14] sm:$0xff]  }
  0x16   : > { %2122 = vmatpush3.bf16.msra.mxu0 %v729_v5  ;;  %v784_v6 = vld [vmem:[%s684_s24] sm:$0xf]  ;;  %s2696_s28 = sld [smem:[#allocation7_spill]]  ;;  %s688_s23 = scalar_lea.vmem %s2681_s18, %s2019_s30 }
  0x17   : > { %2141 = vmatprep.subr.bf16.mxu0 %v2302_v1  ;;  %v703_v7 = vld [vmem:[%s680_s29] sm:$0xf]  ;;  %2130 = vmatmul.mubr.msk.bf16.vlgmr.msra.gmra.mrb[0].mxu1 %vm793_vm2, %v784_v6  ;;  %s2022_s27 = sshll.u32 %s2699_s25, 1 }
  0x18   : > { %2137 = vmatprep.mubr.msk.bf16.mxu1 %vm2303_vm3, %v2302_v1  ;;  %2134 = vmatpush3.bf16.msra.mxu1 %v2254_v8  ;;  %v2038_v5 = vld [vmem:[%s2672_s9] ss:$0 sm:$0xff]  ;;  %v2039_v6 = vld [vmem:[%s2672_s9 + $0x1] ss:$0 sm:$0xff]  ;;  %s701_s22 = scalar_lea.vmem %s2684_s21, %s2022_s27 }
  0x19   : > { %2124 = vmatmul.mubr.msk.bf16.vlgmr.msra.gmra.mrb[0].mxu0 %vm723_vm4, %v703_v7  ;;  %2135 = vmatprep.subr.bf16.mxu1 %v2302_v1 }
  0x1a   : > { %2145 = vmatprep.mubr.msk.bf16.mxu0 %vm2303_vm3, %v2302_v1  ;;  %2142 = vmatpush3.bf16.msra.mxu0 %v2255_v9 }
  0x1b   : > { %2143 = vmatprep.subr.bf16.mxu0 %v2302_v1 }
  0x1c   : > { %2136 = vmatpush3.bf16.msra.mxu1 %v2256_v10  ;;  %v2028_v12 = vld [vmem:[%s2696_s28] ss:$0 sm:$0xff] }
  0x1d   : > { %2149 = vmatprep.subr.bf16.mxu1 %v2302_v1 }
  0x1e   : > { %2144 = vmatpush3.bf16.msra.mxu0 %v2257_v11 }
  0x1f   : > { %2157 = vmatprep.subr.bf16.mxu0 %v2302_v1 }
  0xea   : > { %v835_v14 = vpop.f32.mrb[0].mxu1 }
  0xeb   : > { %v836_v16 = vadd.f32 %v2028_v12, %v835_v14  ;;  %v2131_v18 = vpop.f32.mrb[1].mxu1 }
  0xec   : > { %v765_v15 = vpop.f32.mrb[0].mxu0  ;;  %v838_v20 = vpop.f32.mrb[2].mxu1 }
  0xed   : > { %v766_v17 = vadd.f32 %v2024_v13, %v765_v15  ;;  %v2125_v19 = vpop.f32.mrb[1].mxu0  ;;  %v841_v22 = vsub.f32 0.0, %v836_v16  ;;  %v2132_v24 = vpop.f32.mrb[3].mxu1 }
  0xee   : > { %v768_v21 = vpop.f32.mrb[2].mxu0 }
  0xef   : > { %v771_v23 = vmul.f32 %v766_v17, %v766_v17  ;;  %v2126_v25 = vpop.f32.mrb[3].mxu0  ;;  %v842_v26 = vmul.f32 1.442695, %v841_v22 }
  0xf1   : > { %v773_v27 = vsel %vm772_vm5, %v771_v23, 0.0  ;;  %2272 = vpow2.f32 %v842_v26 }
  0xf2   : > { %v774_v28 = vrot.slane %v773_v27, 4 }
  0xf4   : > { %v775_v29 = vadd.f32 %v774_v28, %v773_v27  ;;  %v2270_v27 = vld [vmem:[%s2679_s16] sm:$0xff]   ;;  %v2271_v28 = vld [vmem:[%s2679_s16 + $0x8] sm:$0xff]  }
  0xf6   : > { %v776_v30 = vrot.slane %v775_v29, 2 }
  0xf8   : > { %v777_v31 = vadd.f32 %v776_v30, %v775_v29 }
  0xfa   : > { %v778_v32 = vrot.slane %v777_v31, 1 }
  0xfb   : > { %v2273_v34 = vpop.eup %2272 }
  0xfc   : > { %v779_v33 = vadd.f32 %v778_v32, %v777_v31  ;;  %v844_v35 = vadd.f32 1.0, %v2273_v34 }
  0xfe   : > { %v780_v36 = vadd.f32 1e-12, %v779_v33  ;;  %2274 = vrcp.f32 %v844_v35 }
 0x100   : > { %2276 = vrsqrt.f32 %v780_v36 }
 0x108   : > { %v2275_v37 = vpop.eup %2274 }
 0x10a   : > { %v2277_v38 = vpop.eup %2276 }
 0x10b   : > { %v782_v39 = vmul.f32 %v2277_v38, %v766_v17  ;;  %v2059_v38 = vld [vmem:[%s2678_s15] ss:$0 sm:$0xff] }
 0x10d   : > { %783 = vst.msk [vmem:[%s688_s23] sm:$0xff] %vm772_vm5, %v782_v39  ;;  %v847_v40 = vmul.f32 %v2275_v37, %v782_v39  ;;  %v2054_v37 = vld [vmem:[%s2676_s13] ss:$0 sm:$0xff]  ;;  %s2075_s23 = sshll.u32 %s2699_s25, 4 }
 0x10e   : > { %s693_s26 = scalar_lea.vmem %s2682_s19, %s2075_s23 }
 0x10f   : > { %v848_v43 = vpack.c.bf16 %v847_v40, %v847_v40 }
 0x111   : > { %2138 = vmatmul.mubr.msk.bf16.vlgmr.msra.gmra.mrb[4].mxu1 %vm772_vm5, %v848_v43  ;;  %2146 = vmatmul.mubr.msk.bf16.vlgmr.msra.gmra.mrb[4].mxu0 %vm772_vm5, %v848_v43 }
 0x112   : > { %2150 = vmatpush3.bf16.msra.mxu1 %v2258_v41  ;;  %2158 = vmatpush3.bf16.msra.mxu0 %v2259_v42 }
 0x113   : > { %2151 = vmatprep.subr.bf16.mxu1 %v2302_v1  ;;  %2159 = vmatprep.subr.bf16.mxu0 %v2302_v1 }
 0x114   : > { %2153 = vmatprep.mubr.msk.bf16.mxu1 %vm2303_vm3, %v2302_v1  ;;  %2161 = vmatprep.mubr.msk.bf16.mxu0 %vm2303_vm3, %v2302_v1 }
 0x116   : > { %2152 = vmatpush3.bf16.msra.mxu1 %v2260_v44  ;;  %2160 = vmatpush3.bf16.msra.mxu0 %v2261_v45 }
 0x117   : > { %2165 = vmatprep.subr.bf16.mxu1 %v2302_v1  ;;  %2173 = vmatprep.subr.bf16.mxu0 %v2302_v1 }
 0x119   : > { %2154 = vmatmul.mubr.msk.bf16.vlgmr.msra.gmra.mrb[8].mxu1 %vm772_vm5, %v848_v43  ;;  %2162 = vmatmul.mubr.msk.bf16.vlgmr.msra.gmra.mrb[8].mxu0 %vm772_vm5, %v848_v43 }
 0x11a   : > { %2166 = vmatpush3.bf16.msra.mxu1 %v2262_v46  ;;  %2174 = vmatpush3.bf16.msra.mxu0 %v2263_v47 }
 0x11b   : > { %2167 = vmatprep.subr.bf16.mxu1 %v2302_v1  ;;  %2175 = vmatprep.subr.bf16.mxu0 %v2302_v1 }
 0x11c   : > { %2169 = vmatprep.mubr.msk.bf16.mxu1 %vm2303_vm3, %v2302_v1  ;;  %2177 = vmatprep.mubr.msk.bf16.mxu0 %vm2303_vm3, %v2302_v1 }
 0x11e   : > { %2168 = vmatpush3.bf16.msra.mxu1 %v2264_v48  ;;  %2176 = vmatpush3.bf16.msra.mxu0 %v2265_v49 }
 0x11f   : > { %2181 = vmatprep.subr.bf16.mxu1 %v2302_v1  ;;  %2187 = vmatprep.subr.bf16.mxu0 %v2302_v1 }
 0x121   : > { %2170 = vmatmul.mubr.msk.bf16.vlgmr.msra.gmra.mrb[12].mxu1 %vm772_vm5, %v848_v43  ;;  %2178 = vmatmul.mubr.msk.bf16.vlgmr.msra.gmra.mrb[12].mxu0 %vm772_vm5, %v848_v43 }
 0x122   : > { %2182 = vmatpush3.bf16.msra.mxu1 %v2266_v50  ;;  %2183 = vmatprep.mubr.msk.bf16.mxu1 %vm2303_vm3, %v2302_v1 }
 0x123   : > { %2189 = vmatprep.mubr.msk.bf16.mxu0 %vm2303_vm3, %v2302_v1  ;;  %2193 = vmatprep.subr.bf16.mxu1 %v2302_v1 }
 0x124   : > { %2188 = vmatpush3.bf16.msra.mxu0 %v2267_v51 }
 0x125   : > { %2199 = vmatprep.subr.bf16.mxu0 %v2302_v1 }
 0x1e4   : > { %v920_v54 = vpop.f32.mrb[4].mxu1  ;;  %v972_v55 = vpop.f32.mrb[4].mxu0 }
 0x1e5   : > { %v2546_v56 = vadd.f32 %v2030_v52, %v920_v54  ;;  %v2548_v57 = vadd.f32 %v2031_v53, %v972_v55  ;;  %v2139_v58 = vpop.f32.mrb[5].mxu1  ;;  %v2147_v59 = vpop.f32.mrb[5].mxu0  ;;  %v2064_v55 = vld [vmem:[%s2680_s17] ss:$0 sm:$0xff] }
 0x1e6   : > { %v923_v60 = vpop.f32.mrb[6].mxu1  ;;  %v975_v61 = vpop.f32.mrb[6].mxu0 }
 0x1e7   : > { %v1230_v0 = vpack.c.bf16 %v2546_v56, %v2546_v56  ;;  %v1231_v2 = vpack.c.bf16 %v2548_v57, %v2548_v57  ;;  %v2140_v3 = vpop.f32.mrb[7].mxu1  ;;  %v2148_v4 = vpop.f32.mrb[7].mxu0 }
 0x1e9   : > { %2184 = vmatmul.mubr.msk.bf16.vlgmr.msra.gmra.mrb[16].mxu1 %vm1249_vm6, %v1230_v0  ;;  %2190 = vmatmul.mubr.msk.bf16.vlgmr.msra.gmra.mrb[16].mxu0 %vm1249_vm6, %v1231_v2 }
 0x1ea   : > { %2194 = vmatpush3.bf16.msra.mxu1 %v2268_v62  ;;  %2200 = vmatpush3.bf16.msra.mxu0 %v2269_v63 }
 0x1eb   : > { %2195 = vmatprep.mubr.msk.bf16.mxu1 %vm2303_vm3, %v2302_v1  ;;  %2201 = vmatprep.mubr.msk.bf16.mxu0 %vm2303_vm3, %v2302_v1 }
 0x1ec   : > { %v1046_v7 = vpop.f32.mrb[8].mxu1  ;;  %v1098_v8 = vpop.f32.mrb[8].mxu0  ;;  %2205 = vmatprep.subr.bf16.mxu1 %v2302_v1  ;;  %2211 = vmatprep.subr.bf16.mxu0 %v2302_v1 }
 0x1ed   : > { %v2574_v9 = vadd.f32 %v2038_v5, %v1046_v7  ;;  %v2576_v10 = vadd.f32 %v2039_v6, %v1098_v8  ;;  %v2155_v11 = vpop.f32.mrb[9].mxu1  ;;  %v2163_v12 = vpop.f32.mrb[9].mxu0 }
 0x1ee   : > { %v1049_v13 = vpop.f32.mrb[10].mxu1  ;;  %v1101_v14 = vpop.f32.mrb[10].mxu0 }
 0x1ef   : > { %v1342_v15 = vpack.c.bf16 %v2574_v9, %v2574_v9  ;;  %v1343_v16 = vpack.c.bf16 %v2576_v10, %v2576_v10  ;;  %v2156_v17 = vpop.f32.mrb[11].mxu1  ;;  %v2164_v18 = vpop.f32.mrb[11].mxu0 }
 0x1f1   : > { %2196 = vmatmul.mubr.msk.bf16.vlgmr.msra.gmra.mrb[20].mxu1 %vm1249_vm6, %v1342_v15  ;;  %2202 = vmatmul.mubr.msk.bf16.vlgmr.msra.gmra.mrb[20].mxu0 %vm1249_vm6, %v1343_v16 }
 0x1f2   : > { %2207 = vmatprep.mubr.msk.bf16.mxu1 %vm2303_vm3, %v2302_v1  ;;  %2213 = vmatprep.mubr.msk.bf16.mxu0 %vm2303_vm3, %v2302_v1 }
 0x1f3   : > { %2206 = vmatpush3.bf16.msra.mxu1 %v2270_v27  ;;  %2212 = vmatpush3.bf16.msra.mxu0 %v2271_v28  ;;  %v2047_v27 = vld [vmem:[%s2674_s11 + $0x1] ss:$0 sm:$0xff] }
 0x1f4   : > { %v2588_v19 = vpop.f32.mrb[12].mxu1  ;;  %v2590_v20 = vpop.f32.mrb[12].mxu0  ;;  %2217 = vmatprep.subr.bf16.mxu1 %v2302_v1  ;;  %2223 = vmatprep.subr.bf16.mxu0 %v2302_v1 }
 0x1f5   : > { %v2171_v21 = vpop.f32.mrb[13].mxu1  ;;  %v2179_v22 = vpop.f32.mrb[13].mxu0 }
 0x1f6   : > { %v1175_v23 = vpop.f32.mrb[14].mxu1  ;;  %v1227_v24 = vpop.f32.mrb[14].mxu0  ;;  %v2046_v21 = vld [vmem:[%s2674_s11] ss:$0 sm:$0xff] }
 0x1f7   : > { %v2172_v25 = vpop.f32.mrb[15].mxu1  ;;  %v2180_v26 = vpop.f32.mrb[15].mxu0  ;;  %v1173_v24 = vadd.f32 %v2046_v21, %v2588_v19 }
 0x2bc   : > { %v1287_v29 = vpop.f32.mrb[16].mxu1  ;;  %v1336_v30 = vpop.f32.mrb[16].mxu0 }
 0x2bd   : > { %v2185_v31 = vpop.f32.mrb[17].mxu1  ;;  %v2191_v32 = vpop.f32.mrb[17].mxu0  ;;  %v1288_v41 = vadd.f32 %v2054_v37, %v1287_v29  ;;  %v1337_v42 = vadd.f32 %v2054_v37, %v1336_v30  ;;  %v1713_v29 = vpack.c.bf16 %v1173_v24, %v1173_v24  ;;  %v1225_v30 = vadd.f32 %v2047_v27, %v2590_v20 }
 0x2be   : > { %v1290_v33 = vpop.f32.mrb[18].mxu1  ;;  %v1339_v34 = vpop.f32.mrb[18].mxu0 }
 0x2bf   : > { %v2186_v35 = vpop.f32.mrb[19].mxu1  ;;  %v2192_v36 = vpop.f32.mrb[19].mxu0  ;;  %v1720_v32 = vsel %vm1718_vm7, %v1713_v29, 0  ;;  %v1714_v33 = vpack.c.bf16 %v1225_v30, %v1225_v30 }
 0x2c1   : > { %v1766_v34 = vsel %vm1718_vm7, %v1714_v33, 0 }
 0x2c4   : > { %v1398_v39 = vpop.f32.mrb[20].mxu1  ;;  %v1447_v40 = vpop.f32.mrb[20].mxu0 }
 0x2c5   : > { %v1399_v43 = vadd.f32 %v2059_v38, %v1398_v39  ;;  %v1448_v44 = vadd.f32 %v2059_v38, %v1447_v40  ;;  %v2197_v45 = vpop.f32.mrb[21].mxu1  ;;  %v2203_v46 = vpop.f32.mrb[21].mxu0 }
 0x2c6   : > { %v1401_v47 = vpop.f32.mrb[22].mxu1  ;;  %v1450_v48 = vpop.f32.mrb[22].mxu0 }
 0x2c7   : > { %v1453_v49 = vmul.f32 %v1399_v43, %v1288_v41  ;;  %v1454_v50 = vmul.f32 %v1448_v44, %v1337_v42  ;;  %v2198_v51 = vpop.f32.mrb[23].mxu1  ;;  %v2204_v52 = vpop.f32.mrb[23].mxu0 }
 0x2c9   : > { %v1455_v53 = vpack.c.bf16 %v1453_v49, %v1453_v49  ;;  %v1456_v54 = vpack.c.bf16 %v1454_v50, %v1454_v50 }
 0x2cb   : > { %2208 = vmatmul.mubr.msk.bf16.vlgmr.msra.gmra.mrb[24].mxu1 %vm1249_vm6, %v1455_v53  ;;  %2214 = vmatmul.mubr.msk.bf16.vlgmr.msra.gmra.mrb[24].mxu0 %vm1249_vm6, %v1456_v54 }
 0x2cc   : > { %2219 = vmatprep.mubr.msk.bf16.mxu1 %vm2303_vm3, %v2302_v1  ;;  %2225 = vmatprep.mubr.msk.bf16.mxu0 %vm2303_vm3, %v2302_v1 }
 0x39e   : > { %v1511_v58 = vpop.f32.mrb[24].mxu1  ;;  %v1560_v59 = vpop.f32.mrb[24].mxu0 }
 0x39f   : > { %v1512_v60 = vadd.f32 %v2064_v55, %v1511_v58  ;;  %v1561_v61 = vadd.f32 %v2064_v55, %v1560_v59  ;;  %v2209_v62 = vpop.f32.mrb[25].mxu1  ;;  %v2215_v63 = vpop.f32.mrb[25].mxu0 }
 0x3a0   : > { %v1514_v0 = vpop.f32.mrb[26].mxu1  ;;  %v1563_v2 = vpop.f32.mrb[26].mxu0 }
 0x3a1   : > { %v1566_v3 = vsub.f32 0.0, %v1512_v60  ;;  %v1567_v4 = vsub.f32 0.0, %v1561_v61  ;;  %v2210_v5 = vpop.f32.mrb[27].mxu1  ;;  %v2216_v6 = vpop.f32.mrb[27].mxu0 }
 0x3a3   : > { %v1568_v7 = vmul.f32 1.442695, %v1566_v3  ;;  %v1570_v8 = vmul.f32 1.442695, %v1567_v4 }
 0x3a5   : > { %2278 = vpow2.f32 %v1568_v7 }
 0x3a6   : > { %2280 = vpow2.f32 %v1570_v8 }
 0x3af   : > { %v2279_v11 = vpop.eup %2278 }
 0x3b0   : > { %v2281_v12 = vpop.eup %2280  ;;  %v1572_v13 = vadd.f32 1.0, %v2279_v11 }
 0x3b1   : > { %v1573_v14 = vadd.f32 1.0, %v2281_v12 }
 0x3b2   : > { %2282 = vrcp.f32 %v1572_v13 }
 0x3b3   : > { %2284 = vrcp.f32 %v1573_v14 }
 0x3bc   : > { %v2283_v15 = vpop.eup %2282 }
 0x3bd   : > { %1584 = vrot.lane.b32.xlu0 %v2283_v15, %s2304_s0  ;;  %v2285_v16 = vpop.eup %2284 }
 0x3c1   : > { %1586 = vrot.lane.b32.xlu0 %v2285_v16, %s2304_s0  ;;  %s697_s0 = scalar_lea.vmem %s2683_s20, %s2022_s27 }
 0x42f   : > { %v1585_v17 = vpop.permute.xlu0 %1584 }
 0x430   : > { %v1590_v18 = vmul.f32 %v1585_v17, %v2574_v9  ;;  %v1578_v9 = vmul.f32 %v2283_v15, %v2546_v56 }
 0x432   : > { %v1592_v22 = vpack.c.bf16 %v1590_v18, %v1590_v18  ;;  %v1580_v19 = vpack.c.bf16 %v1578_v9, %v1578_v9 }
 0x433   : > { %v1587_v23 = vpop.permute.xlu0 %1586 }
 0x434   : > { %v1598_v25 = vsel %vm1249_vm6, %v1592_v22, 0  ;;  %v1591_v26 = vmul.f32 %v1587_v23, %v2576_v10  ;;  %v1579_v10 = vmul.f32 %v2285_v16, %v2548_v57 }
 0x435   : > { %2218 = vmatpush3.bf16.xpose.msra.mxu1 %v1598_v25 }
 0x436   : > { %v1593_v28 = vpack.c.bf16 %v1591_v26, %v1591_v26  ;;  %2229 = vmatprep.subr.bf16.mxu1 %v2302_v1  ;;  %v1581_v56 = vpack.c.bf16 %v1579_v10, %v1579_v10 }
 0x438   : > { %v1644_v31 = vsel %vm1249_vm6, %v1593_v28, 0 }
 0x439   : > { %2224 = vmatpush3.bf16.xpose.msra.mxu0 %v1644_v31 }
 0x43a   : > { %2235 = vmatprep.subr.bf16.mxu0 %v2302_v1 }
 0x43c   : > { %2220 = vmatmul.mubr.msk.bf16.vlgmr.msra.gmra.mrb[28].mxu1 %vm1249_vm6, %v1580_v19 }
 0x43d   : > { %2230 = vmatpush3.bf16.msra.mxu1 %v1720_v32  ;;  %2231 = vmatprep.mubr.msk.bf16.mxu1 %vm2303_vm3, %v2302_v1 }
 0x440   : > { %2226 = vmatmul.mubr.msk.bf16.vlgmr.msra.gmra.mrb[28].mxu0 %vm1249_vm6, %v1581_v56 }
 0x441   : > { %2236 = vmatpush3.bf16.msra.mxu0 %v1766_v34  ;;  %2237 = vmatprep.mubr.msk.bf16.mxu0 %vm2303_vm3, %v2302_v1 }
 0x50f   : > { %v1634_v20 = vpop.f32.mrb[28].mxu1 }
 0x510   : > { %v1686_v57 = vmul.f32 0.25, %v1634_v20  ;;  %v2221_v35 = vpop.f32.mrb[29].mxu1 }
 0x511   : > { %v1637_v36 = vpop.f32.mrb[30].mxu1 }
 0x512   : > { %v2222_v37 = vpop.f32.mrb[31].mxu1  ;;  %v1689_v38 = vsel %vm1688_vm8, %v1686_v57, -inf }
 0x513   : > { %1690 = vmax.xlane.f32.xlu1 %v1689_v38  ;;  %v1680_v39 = vpop.f32.mrb[28].mxu0 }
 0x514   : > { %v1687_v40 = vmul.f32 0.25, %v1680_v39  ;;  %v2227_v41 = vpop.f32.mrb[29].mxu0 }
 0x515   : > { %v1683_v42 = vpop.f32.mrb[30].mxu0 }
 0x516   : > { %v2228_v43 = vpop.f32.mrb[31].mxu0  ;;  %v1692_v44 = vsel %vm1688_vm8, %v1687_v40, -inf }
 0x517   : > { %1693 = vmax.xlane.f32.xlu1 %v1692_v44 }
 0x5a0   : > { %v1691_v45 = vpop.xlane.xlu1 %1690 }
 0x5a1   : > { %v1695_v46 = vsub.f32 %v1686_v57, %v1691_v45 }
 0x5a3   : > { %v1697_v1 = vmul.f32 1.442695, %v1695_v46 }
 0x5a4   : > { %v1694_v47 = vpop.xlane.xlu1 %1693 }
 0x5a5   : > { %2286 = vpow2.f32 %v1697_v1  ;;  %v1696_v48 = vsub.f32 %v1687_v40, %v1694_v47 }
 0x5a7   : > { %v1699_v49 = vmul.f32 1.442695, %v1696_v48 }
 0x5a9   : > { %2288 = vpow2.f32 %v1699_v49 }
 0x5af   : > { %v2287_v50 = vpop.eup %2286 }
 0x5b0   : > { %v1701_v51 = vsel %vm1688_vm8, %v2287_v50, 0.0 }
 0x5b1   : > { %1702 = vadd.xlane.f32.xlu0 %v1701_v51 }
 0x5b3   : > { %v2289_v52 = vpop.eup %2288 }
 0x5b4   : > { %v1704_v53 = vsel %vm1688_vm8, %v2289_v52, 0.0 }
 0x5b5   : > { %1705 = vadd.xlane.f32.xlu1 %v1704_v53 }
 0x63e   : > { %v1703_v54 = vpop.xlane.xlu0 %1702 }
 0x63f   : > { %2290 = vrcp.f32 %v1703_v54 }
 0x642   : > { %v1706_v55 = vpop.xlane.xlu1 %1705 }
 0x643   : > { %2292 = vrcp.f32 %v1706_v55 }
 0x649   : > { %v2291_v58 = vpop.eup %2290 }
 0x64a   : > { %v1709_v59 = vmul.f32 %v2291_v58, %v2287_v50 }
 0x64c   : > { %v1711_v60 = vpack.c.bf16 %v1709_v59, %v1709_v59 }
 0x64d   : > { %v2293_v61 = vpop.eup %2292 }
 0x64e   : > { %v1710_v62 = vmul.f32 %v2293_v61, %v2289_v52  ;;  %2232 = vmatmul.mubr.msk.bf16.vlgmr.msra.gmra.mrb[32].mxu1 %vm1688_vm8, %v1711_v60 }
 0x650   : > { %v1712_v63 = vpack.c.bf16 %v1710_v62, %v1710_v62 }
 0x652   : > { %2238 = vmatmul.mubr.msk.bf16.vlgmr.msra.gmra.mrb[32].mxu0 %vm1688_vm8, %v1712_v63 }
 0x721   : > { %v1756_v0 = vpop.f32.mrb[32].mxu1 }
 0x722   : > { %1808 = vst.msk [vmem:[%s693_s26] sm:$0xff] %vm1249_vm6, %v1756_v0  ;;  %v1810_v2 = vsel %vm1249_vm6, %v1756_v0, 0.0  ;;  %v1831_v3 = vmul.f32 %v1756_v0, %v1756_v0  ;;  %v2233_v4 = vpop.f32.mrb[33].mxu1 }
 0x723   : > { %v1811_v5 = vrot.slane %v1810_v2, 4  ;;  %v1759_v6 = vpop.f32.mrb[34].mxu1 }
 0x724   : > { %v1833_v7 = vsel %vm1249_vm6, %v1831_v3, 0.0  ;;  %v2234_v8 = vpop.f32.mrb[35].mxu1 }
 0x725   : > { %v1812_v11 = vadd.f32 %v1811_v5, %v1810_v2  ;;  %v1834_v12 = vrot.slane %v1833_v7, 4  ;;  %v1802_v13 = vpop.f32.mrb[32].mxu0 }
 0x726   : > { %1809 = vst.msk [vmem:[%s693_s26 + $0x8] sm:$0xff] %vm1249_vm6, %v1802_v13  ;;  %v1817_v14 = vsel %vm1249_vm6, %v1802_v13, 0.0  ;;  %v1832_v15 = vmul.f32 %v1802_v13, %v1802_v13  ;;  %v2239_v16 = vpop.f32.mrb[33].mxu0 }
 0x727   : > { %v1813_v17 = vrot.slane %v1812_v11, 2  ;;  %v1835_v18 = vadd.f32 %v1834_v12, %v1833_v7  ;;  %v1818_v21 = vrot.slane %v1817_v14, 4  ;;  %v1805_v22 = vpop.f32.mrb[34].mxu0 }
 0x728   : > { %v1840_v23 = vsel %vm1249_vm6, %v1832_v15, 0.0  ;;  %v2240_v24 = vpop.f32.mrb[35].mxu0 }
 0x729   : > { %v1814_v25 = vadd.f32 %v1813_v17, %v1812_v11  ;;  %v1836_v26 = vrot.slane %v1835_v18, 2  ;;  %v1819_v27 = vadd.f32 %v1818_v21, %v1817_v14  ;;  %v1841_v28 = vrot.slane %v1840_v23, 4 }
 0x72b   : > { %v1837_v9 = vadd.f32 %v1836_v26, %v1835_v18  ;;  %v1820_v29 = vrot.slane %v1819_v27, 2  ;;  %v1842_v30 = vadd.f32 %v1841_v28, %v1840_v23  ;;  %v1815_v31 = vrot.slane %v1814_v25, 1 }
 0x72d   : > { %v1821_v19 = vadd.f32 %v1820_v29, %v1819_v27  ;;  %v1843_v10 = vrot.slane %v1842_v30, 2  ;;  %v1838_v32 = vrot.slane %v1837_v9, 1  ;;  %v1816_v34 = vadd.f32 %v1815_v31, %v1814_v25 }
 0x72f   : > { %v1822_v33 = vrot.slane %v1821_v19, 1  ;;  %v1844_v56 = vadd.f32 %v1843_v10, %v1842_v30  ;;  %v1839_v35 = vadd.f32 %v1838_v32, %v1837_v9 }
 0x731   : > { %v1823_v20 = vadd.f32 %v1822_v33, %v1821_v19  ;;  %v1845_v57 = vrot.slane %v1844_v56, 1 }
 0x733   : > { %v1827_v36 = vsel %vm1826_vm9, %v1823_v20, %v1816_v34  ;;  %v1846_v37 = vadd.f32 %v1845_v57, %v1844_v56 }
 0x734   : > { %1830 = vst.msk [vmem:[%s697_s0] sm:$0x3] %vm1829_vm10, %v1827_v36 }
 0x735   : > { %v1849_v38 = vsel %vm1826_vm9, %v1846_v37, %v1839_v35 }
 0x736   : > { %1851 = vst.msk [vmem:[%s701_s22] sm:$0x3] %vm1829_vm10, %v1849_v38 }
 0x737 PF: > { %s32_s2 = sadd.s32 1, %s2300_s2  }
 0x738   : > { %p29_p4 = scmp.ge.s32.totalorder %s32_s2, 4  }
 0x73a   :  { %31 = sbr.rel (!%p29_p4) target bundleno = 7 (0x7), region = 161 }

</bundles_post_ra>
